<compile_context>
chip_gen: v6e
topology: v6e:2x2x1
jax: 0.10.0
libtpu: 0.0.40
codegen_flags: <defaults>
</compile_context>

<pallas_src>
import math
from functools import partial

import jax
import jax.numpy as jnp
from jax.experimental import pallas as pl
from jax.experimental.pallas import tpu as pltpu

_BN_EPS = 1e-5
_BN_SCALE = 1.0 / math.sqrt(1.0 + _BN_EPS)

_MODS = ("l", "a", "v")
# GAU key -> (zf modality, xf modality).  Output channels == xf channels.
_GAUS = {"av": ("a", "v"), "lv": ("l", "v"),
         "va": ("v", "a"), "la": ("l", "a"),
         "al": ("a", "l"), "vl": ("v", "l")}
_GAU_ORDER = ("av", "lv", "va", "la", "al", "vl")
# For each output modality, the two GAUs whose messages feed it (xf == modality).
_XF_GAUS = {"v": ("av", "lv"), "a": ("va", "la"), "l": ("al", "vl")}
# For each modality, the two GAUs for which it is the attention source (zf == modality).
_ZF_GAUS = {"a": ("av", "al"), "l": ("lv", "la"), "v": ("va", "vl")}


def _pack_params(params):
    """Concatenate the per-GAU 1x1-conv weights by the modality that feeds them.

    For modality m the packed matrix is
        [wq_g1 | wfx_g1 | wq_g2 | wfx_g2 | ws_h1 | wg_h1 | ws_h2 | wg_h2]
    (g1,g2 = GAUs with xf==m, h1,h2 = GAUs with zf==m) with a matching packed
    bias [bq|bf|bq|bf|bs|bg|bs|bg], so each modality needs one matmul.
    Returns packed weights/biases plus static column offsets per GAU.
    """
    w_packed, b_packed = {}, {}
    meta = {g: {} for g in _GAU_ORDER}
    for m in _MODS:
        w_parts, b_parts, off = [], [], 0
        for g in _XF_GAUS[m]:               # m is the attention target (xf) of g
            p = params[g]
            cx = int(p["wq"].shape[1])
            meta[g].update(xmod=m, cx=cx, q_off=off, f_off=off + cx)
            w_parts += [p["wq"], p["wfx"]]
            b_parts += [p["bq"], p["bf"]]
            off += 2 * cx
        for g in _ZF_GAUS[m]:               # m is the source (zf) of g
            p = params[g]
            cx = int(p["ws"].shape[1])
            meta[g].update(zmod=m, s_off=off, g_off=off + cx)
            w_parts += [p["ws"], p["wg"]]
            b_parts += [p["bs"], p["bg"]]
            off += 2 * cx
        w_packed[m] = jnp.concatenate(w_parts, axis=1)
        b_packed[m] = jnp.concatenate(b_parts, axis=1)
    return w_packed, b_packed, meta


def _mgat_kernel(meta, B, N, gatw, meanw,
                 l_ref, a_ref, v_ref,
                 wl_ref, bl_ref, wa_ref, ba_ref, wv_ref, bv_ref,
                 wfe_av_ref, wfe_lv_ref, wfe_va_ref, wfe_la_ref,
                 wfe_al_ref, wfe_vl_ref,
                 ol_ref, oa_ref, ov_ref):
    x_refs = {"l": l_ref, "a": a_ref, "v": v_ref}
    w_refs = {"l": (wl_ref, bl_ref), "a": (wa_ref, ba_ref), "v": (wv_ref, bv_ref)}
    wfe_refs = {"av": wfe_av_ref, "lv": wfe_lv_ref, "va": wfe_va_ref,
                "la": wfe_la_ref, "al": wfe_al_ref, "vl": wfe_vl_ref}
    o_refs = {"l": ol_ref, "a": oa_ref, "v": ov_ref}

    # ---- [B, C, N] -> node-major flat [B*N, C] (layout transpose in-kernel).
    x = {}
    for m in _MODS:
        rows = [x_refs[m][b].T for b in range(B)]                 # each [N, C]
        x[m] = rows[0] if B == 1 else jnp.concatenate(rows, axis=0)

    # ---- one fused projection matmul per modality (all 1x1 convs reading it).
    proj = {}
    for m in _MODS:
        w_ref, b_ref = w_refs[m]
        proj[m] = (jnp.dot(x[m], w_ref[...], preferred_element_type=jnp.float32)
                   + b_ref[...])                                   # [B*N, Wtot]

    # ---- per-GAU cross attention + message passing.
    msg = {}
    for g in _GAU_ORDER:
        mt = meta[g]
        cx, xm, zm = mt["cx"], mt["xmod"], mt["zmod"]
        q  = proj[xm][:, mt["q_off"]:mt["q_off"] + cx]             # xf @ wq + bq
        fx = proj[xm][:, mt["f_off"]:mt["f_off"] + cx]             # xf @ wfx + bf
        s  = proj[zm][:, mt["s_off"]:mt["s_off"] + cx]             # zf @ ws + bs
        zg = proj[zm][:, mt["g_off"]:mt["g_off"] + cx]             # zf @ wg + bg
        zg = jnp.maximum(zg * _BN_SCALE, 0.0)                      # g conv: BN + ReLU

        emb_rows = []
        for b in range(B):                                         # softmax per batch row
            rs = slice(b * N, (b + 1) * N)
            scores = meanw * jax.lax.dot_general(
                q[rs], s[rs], (((1,), (1,)), ((), ())),
                preferred_element_type=jnp.float32)                # [N, N]
            scores = scores - jnp.max(scores, axis=-1, keepdims=True)
            p = jnp.exp(scores)
            inv = pl.reciprocal(jnp.sum(p, axis=-1, keepdims=True), approx=True)
            attn = p * inv
            emb_rows.append(jnp.dot(attn, zg[rs],
                                    preferred_element_type=jnp.float32))
        emb = emb_rows[0] if B == 1 else jnp.concatenate(emb_rows, axis=0)

        pre = jnp.dot(emb, wfe_refs[g][...],
                      preferred_element_type=jnp.float32) + fx     # fi conv
        msg[g] = jnp.maximum(pre * _BN_SCALE, 0.0)                 # BN + ReLU

    # ---- combine the two messages per modality + residual, store as [B, C, N].
    for m in _MODS:
        g1, g2 = _XF_GAUS[m]
        res = gatw * msg[g1] + gatw * msg[g2] + x[m]               # [B*N, C]
        oref = o_refs[m]
        for b in range(B):
            oref[b] = res[b * N:(b + 1) * N, :].T.astype(oref.dtype)


def mgat_forward(proj_x_l, proj_x_a, proj_x_v, params, gatw=1.0, meanw=1.3):
    """Inputs in PyTorch layout [B, C, N]; returns (l_all, a_all, v_all) in [B, C, N]."""
    B, d_l, N = proj_x_l.shape
    d_a, d_v = proj_x_a.shape[1], proj_x_v.shape[1]
    dtype = proj_x_l.dtype

    w_packed, b_packed, meta = _pack_params(params)
    inputs = [proj_x_l, proj_x_a, proj_x_v,
              w_packed["l"], b_packed["l"],
              w_packed["a"], b_packed["a"],
              w_packed["v"], b_packed["v"]]
    inputs += [params[g]["wfe"] for g in _GAU_ORDER]

    def full_spec(shape):
        return pl.BlockSpec(shape, lambda i, _n=len(shape): (0,) * _n)

    out_shape = (jax.ShapeDtypeStruct((B, d_l, N), dtype),
                 jax.ShapeDtypeStruct((B, d_a, N), dtype),
                 jax.ShapeDtypeStruct((B, d_v, N), dtype))

    kernel = partial(_mgat_kernel, meta, B, N, float(gatw), float(meanw))
    l_all, a_all, v_all = pl.pallas_call(
        kernel,
        out_shape=out_shape,
        grid=(1,),                       # whole problem in one step; B folded into matmul M
        in_specs=[full_spec(t.shape) for t in inputs],
        out_specs=tuple(full_spec(s.shape) for s in out_shape),
        compiler_params=pltpu.CompilerParams(dimension_semantics=("arbitrary",)),
    )(*inputs)
    return l_all, a_all, v_all


def _uniform(key, shape, fan_in):
    bound = 1.0 / math.sqrt(fan_in)
    return jax.random.uniform(key, shape, jnp.float32, -bound, bound)


def init_gau_params(key, c_x, c_z):
    """GAU(in_channel=c_x, out_channel=c_z): xf has c_x channels, zf has c_z."""
    ks = jax.random.split(key, 10)
    return {
        "wq":  _uniform(ks[0], (c_x, c_x), c_x),
        "bq":  _uniform(ks[1], (1, c_x), c_x),
        "ws":  _uniform(ks[2], (c_z, c_x), c_z),
        "bs":  _uniform(ks[3], (1, c_x), c_z),
        "wg":  _uniform(ks[4], (c_z, c_x), c_z),
        "bg":  _uniform(ks[5], (1, c_x), c_z),
        "wfe": _uniform(ks[6], (c_x, c_x), 2 * c_x),   # fi conv, embedding half
        "wfx": _uniform(ks[7], (c_x, c_x), 2 * c_x),   # fi conv, xf half
        "bf":  _uniform(ks[8], (1, c_x), 2 * c_x),
    }


def init_mgat_params(key, d_l, d_a, d_v):
    ks = jax.random.split(key, 6)
    return {
        "va": init_gau_params(ks[0], d_a, d_v),   # GAU(fus_d_a, fus_d_v)
        "vl": init_gau_params(ks[1], d_l, d_v),   # GAU(fus_d_l, fus_d_v)
        "av": init_gau_params(ks[2], d_v, d_a),   # GAU(fus_d_v, fus_d_a)
        "al": init_gau_params(ks[3], d_l, d_a),   # GAU(fus_d_l, fus_d_a)
        "la": init_gau_params(ks[4], d_a, d_l),   # GAU(fus_d_a, fus_d_l)
        "lv": init_gau_params(ks[5], d_v, d_l),   # GAU(fus_d_v, fus_d_l)
    }


if __name__ == "__main__":
    B, N = 2, 8
    d_l, d_a, d_v = 32, 16, 24

    key = jax.random.PRNGKey(0)
    k_params, k_l, k_a, k_v = jax.random.split(key, 4)

    params = init_mgat_params(k_params, d_l, d_a, d_v)
    proj_x_l = jax.random.normal(k_l, (B, d_l, N), jnp.float32)
    proj_x_a = jax.random.normal(k_a, (B, d_a, N), jnp.float32)
    proj_x_v = jax.random.normal(k_v, (B, d_v, N), jnp.float32)

    l_all, a_all, v_all = jax.jit(mgat_forward)(proj_x_l, proj_x_a, proj_x_v, params)
    jax.block_until_ready((l_all, a_all, v_all))

    assert l_all.shape == (B, d_l, N)
    assert a_all.shape == (B, d_a, N)
    assert v_all.shape == (B, d_v, N)
    assert all(bool(jnp.isfinite(t).all()) for t in (l_all, a_all, v_all))
    print("KERNEL_OK")
</pallas_src>

<mosaic_0001>
module attributes {stable_mosaic.version = 11 : i64} {
  func.func @_mgat_kernel(%arg0: i32, %arg1: memref<2x32x8xf32, #tpu.memory_space<vmem>>, %arg2: memref<2x16x8xf32, #tpu.memory_space<vmem>>, %arg3: memref<2x24x8xf32, #tpu.memory_space<vmem>>, %arg4: memref<32x208xf32, #tpu.memory_space<vmem>>, %arg5: memref<1x208xf32, #tpu.memory_space<vmem>>, %arg6: memref<16x176xf32, #tpu.memory_space<vmem>>, %arg7: memref<1x176xf32, #tpu.memory_space<vmem>>, %arg8: memref<24x192xf32, #tpu.memory_space<vmem>>, %arg9: memref<1x192xf32, #tpu.memory_space<vmem>>, %arg10: memref<24x24xf32, #tpu.memory_space<vmem>>, %arg11: memref<24x24xf32, #tpu.memory_space<vmem>>, %arg12: memref<16x16xf32, #tpu.memory_space<vmem>>, %arg13: memref<16x16xf32, #tpu.memory_space<vmem>>, %arg14: memref<32x32xf32, #tpu.memory_space<vmem>>, %arg15: memref<32x32xf32, #tpu.memory_space<vmem>>, %arg16: memref<2x32x8xf32, #tpu.memory_space<vmem>>, %arg17: memref<2x16x8xf32, #tpu.memory_space<vmem>>, %arg18: memref<2x24x8xf32, #tpu.memory_space<vmem>>) attributes {dimension_semantics = [#tpu.dimension_semantics<arbitrary>], iteration_bounds = array<i64: 1>, scalar_prefetch = 0 : i64, scratch_operands = 0 : i64, tpu.core_type = #tpu.core_type<tc>, window_params = [{pipeline_mode = #tpu.pipeline_mode<synchronous>, transform_indices = @transform_0, window_bounds = array<i64: 2, 32, 8>}, {pipeline_mode = #tpu.pipeline_mode<synchronous>, transform_indices = @transform_1, window_bounds = array<i64: 2, 16, 8>}, {pipeline_mode = #tpu.pipeline_mode<synchronous>, transform_indices = @transform_2, window_bounds = array<i64: 2, 24, 8>}, {pipeline_mode = #tpu.pipeline_mode<synchronous>, transform_indices = @transform_3, window_bounds = array<i64: 32, 208>}, {pipeline_mode = #tpu.pipeline_mode<synchronous>, transform_indices = @transform_4, window_bounds = array<i64: 1, 208>}, {pipeline_mode = #tpu.pipeline_mode<synchronous>, transform_indices = @transform_5, window_bounds = array<i64: 16, 176>}, {pipeline_mode = #tpu.pipeline_mode<synchronous>, transform_indices = @transform_6, window_bounds = array<i64: 1, 176>}, {pipeline_mode = #tpu.pipeline_mode<synchronous>, transform_indices = @transform_7, window_bounds = array<i64: 24, 192>}, {pipeline_mode = #tpu.pipeline_mode<synchronous>, transform_indices = @transform_8, window_bounds = array<i64: 1, 192>}, {pipeline_mode = #tpu.pipeline_mode<synchronous>, transform_indices = @transform_9, window_bounds = array<i64: 24, 24>}, {pipeline_mode = #tpu.pipeline_mode<synchronous>, transform_indices = @transform_10, window_bounds = array<i64: 24, 24>}, {pipeline_mode = #tpu.pipeline_mode<synchronous>, transform_indices = @transform_11, window_bounds = array<i64: 16, 16>}, {pipeline_mode = #tpu.pipeline_mode<synchronous>, transform_indices = @transform_12, window_bounds = array<i64: 16, 16>}, {pipeline_mode = #tpu.pipeline_mode<synchronous>, transform_indices = @transform_13, window_bounds = array<i64: 32, 32>}, {pipeline_mode = #tpu.pipeline_mode<synchronous>, transform_indices = @transform_14, window_bounds = array<i64: 32, 32>}, {pipeline_mode = #tpu.pipeline_mode<synchronous>, transform_indices = @transform_15, window_bounds = array<i64: 2, 32, 8>}, {pipeline_mode = #tpu.pipeline_mode<synchronous>, transform_indices = @transform_16, window_bounds = array<i64: 2, 16, 8>}, {pipeline_mode = #tpu.pipeline_mode<synchronous>, transform_indices = @transform_17, window_bounds = array<i64: 2, 24, 8>}]} {
    %c0 = arith.constant 0 : index
    %c0_0 = arith.constant 0 : index
    %c0_1 = arith.constant 0 : index
    %0 = vector.load %arg1[%c0, %c0_0, %c0_1] : memref<2x32x8xf32, #tpu.memory_space<vmem>>, vector<1x32x8xf32>
    %1 = vector.shape_cast %0 : vector<1x32x8xf32> to vector<32x8xf32>
    %2 = tpu.transpose %1, [1, 0] : vector<32x8xf32> -> vector<8x32xf32>
    %c1 = arith.constant 1 : index
    %c0_2 = arith.constant 0 : index
    %c0_3 = arith.constant 0 : index
    %3 = vector.load %arg1[%c1, %c0_2, %c0_3] : memref<2x32x8xf32, #tpu.memory_space<vmem>>, vector<1x32x8xf32>
    %4 = vector.shape_cast %3 : vector<1x32x8xf32> to vector<32x8xf32>
    %5 = tpu.transpose %4, [1, 0] : vector<32x8xf32> -> vector<8x32xf32>
    %6 = tpu.concatenate %2, %5 in 0 : vector<8x32xf32>, vector<8x32xf32> -> vector<16x32xf32>
    %c0_4 = arith.constant 0 : index
    %c0_5 = arith.constant 0 : index
    %c0_6 = arith.constant 0 : index
    %7 = vector.load %arg2[%c0_4, %c0_5, %c0_6] : memref<2x16x8xf32, #tpu.memory_space<vmem>>, vector<1x16x8xf32>
    %8 = vector.shape_cast %7 : vector<1x16x8xf32> to vector<16x8xf32>
    %9 = tpu.transpose %8, [1, 0] : vector<16x8xf32> -> vector<8x16xf32>
    %c1_7 = arith.constant 1 : index
    %c0_8 = arith.constant 0 : index
    %c0_9 = arith.constant 0 : index
    %10 = vector.load %arg2[%c1_7, %c0_8, %c0_9] : memref<2x16x8xf32, #tpu.memory_space<vmem>>, vector<1x16x8xf32>
    %11 = vector.shape_cast %10 : vector<1x16x8xf32> to vector<16x8xf32>
    %12 = tpu.transpose %11, [1, 0] : vector<16x8xf32> -> vector<8x16xf32>
    %13 = tpu.concatenate %9, %12 in 0 : vector<8x16xf32>, vector<8x16xf32> -> vector<16x16xf32>
    %c0_10 = arith.constant 0 : index
    %c0_11 = arith.constant 0 : index
    %c0_12 = arith.constant 0 : index
    %14 = vector.load %arg3[%c0_10, %c0_11, %c0_12] : memref<2x24x8xf32, #tpu.memory_space<vmem>>, vector<1x24x8xf32>
    %15 = vector.shape_cast %14 : vector<1x24x8xf32> to vector<24x8xf32>
    %16 = tpu.transpose %15, [1, 0] : vector<24x8xf32> -> vector<8x24xf32>
    %c1_13 = arith.constant 1 : index
    %c0_14 = arith.constant 0 : index
    %c0_15 = arith.constant 0 : index
    %17 = vector.load %arg3[%c1_13, %c0_14, %c0_15] : memref<2x24x8xf32, #tpu.memory_space<vmem>>, vector<1x24x8xf32>
    %18 = vector.shape_cast %17 : vector<1x24x8xf32> to vector<24x8xf32>
    %19 = tpu.transpose %18, [1, 0] : vector<24x8xf32> -> vector<8x24xf32>
    %20 = tpu.concatenate %16, %19 in 0 : vector<8x24xf32>, vector<8x24xf32> -> vector<16x24xf32>
    %c0_16 = arith.constant 0 : index
    %c0_17 = arith.constant 0 : index
    %21 = vector.load %arg4[%c0_16, %c0_17] : memref<32x208xf32, #tpu.memory_space<vmem>>, vector<32x208xf32>
    %cst = arith.constant dense<0.000000e+00> : vector<16x208xf32>
    %22 = tpu.matmul %6, %21, %cst {dimension_numbers = #tpu.dot_dimension_numbers<[1], [0], [0], [1], [0, 0, 1, 1], [], []>} : vector<16x32xf32>, vector<32x208xf32>, vector<16x208xf32> -> vector<16x208xf32>
    %c0_18 = arith.constant 0 : index
    %c0_19 = arith.constant 0 : index
    %23 = vector.load %arg5[%c0_18, %c0_19] : memref<1x208xf32, #tpu.memory_space<vmem>>, vector<1x208xf32>
    %24 = vector.broadcast %23 : vector<1x208xf32> to vector<16x208xf32>
    %25 = arith.addf %22, %24 : vector<16x208xf32>
    %c0_20 = arith.constant 0 : index
    %c0_21 = arith.constant 0 : index
    %26 = vector.load %arg6[%c0_20, %c0_21] : memref<16x176xf32, #tpu.memory_space<vmem>>, vector<16x176xf32>
    %cst_22 = arith.constant dense<0.000000e+00> : vector<16x176xf32>
    %27 = tpu.matmul %13, %26, %cst_22 {dimension_numbers = #tpu.dot_dimension_numbers<[1], [0], [0], [1], [0, 0, 1, 1], [], []>} : vector<16x16xf32>, vector<16x176xf32>, vector<16x176xf32> -> vector<16x176xf32>
    %c0_23 = arith.constant 0 : index
    %c0_24 = arith.constant 0 : index
    %28 = vector.load %arg7[%c0_23, %c0_24] : memref<1x176xf32, #tpu.memory_space<vmem>>, vector<1x176xf32>
    %29 = vector.broadcast %28 : vector<1x176xf32> to vector<16x176xf32>
    %30 = arith.addf %27, %29 : vector<16x176xf32>
    %c0_25 = arith.constant 0 : index
    %c0_26 = arith.constant 0 : index
    %31 = vector.load %arg8[%c0_25, %c0_26] : memref<24x192xf32, #tpu.memory_space<vmem>>, vector<24x192xf32>
    %cst_27 = arith.constant dense<0.000000e+00> : vector<16x192xf32>
    %32 = tpu.matmul %20, %31, %cst_27 {dimension_numbers = #tpu.dot_dimension_numbers<[1], [0], [0], [1], [0, 0, 1, 1], [], []>} : vector<16x24xf32>, vector<24x192xf32>, vector<16x192xf32> -> vector<16x192xf32>
    %c0_28 = arith.constant 0 : index
    %c0_29 = arith.constant 0 : index
    %33 = vector.load %arg9[%c0_28, %c0_29] : memref<1x192xf32, #tpu.memory_space<vmem>>, vector<1x192xf32>
    %34 = vector.broadcast %33 : vector<1x192xf32> to vector<16x192xf32>
    %35 = arith.addf %32, %34 : vector<16x192xf32>
    %36 = vector.extract_strided_slice %35 {offsets = [0, 0], sizes = [16, 24], strides = [1, 1]} : vector<16x192xf32> to vector<16x24xf32>
    %37 = vector.extract_strided_slice %35 {offsets = [0, 24], sizes = [16, 24], strides = [1, 1]} : vector<16x192xf32> to vector<16x24xf32>
    %38 = vector.extract_strided_slice %30 {offsets = [0, 64], sizes = [16, 24], strides = [1, 1]} : vector<16x176xf32> to vector<16x24xf32>
    %39 = vector.extract_strided_slice %30 {offsets = [0, 88], sizes = [16, 24], strides = [1, 1]} : vector<16x176xf32> to vector<16x24xf32>
    %cst_30 = arith.constant 0.999994993 : f32
    %40 = vector.broadcast %cst_30 : f32 to vector<16x24xf32>
    %41 = arith.mulf %39, %40 : vector<16x24xf32>
    %cst_31 = arith.constant 0.000000e+00 : f32
    %42 = vector.broadcast %cst_31 : f32 to vector<16x24xf32>
    %43 = arith.maximumf %41, %42 : vector<16x24xf32>
    %44 = vector.extract_strided_slice %36 {offsets = [0, 0], sizes = [8, 24], strides = [1, 1]} : vector<16x24xf32> to vector<8x24xf32>
    %45 = vector.extract_strided_slice %38 {offsets = [0, 0], sizes = [8, 24], strides = [1, 1]} : vector<16x24xf32> to vector<8x24xf32>
    %cst_32 = arith.constant dense<0.000000e+00> : vector<8x8xf32>
    %46 = tpu.matmul %44, %45, %cst_32 {dimension_numbers = #tpu.dot_dimension_numbers<[1], [1], [0], [0], [0, 0, 1, 0], [], []>} : vector<8x24xf32>, vector<8x24xf32>, vector<8x8xf32> -> vector<8x8xf32>
    %cst_33 = arith.constant 1.300000e+00 : f32
    %47 = vector.broadcast %cst_33 : f32 to vector<8x8xf32>
    %48 = arith.mulf %47, %46 : vector<8x8xf32>
    %cst_34 = arith.constant dense<0xFF800000> : vector<8xf32>
    %49 = vector.multi_reduction <maximumf>, %48, %cst_34 [1] : vector<8x8xf32> to vector<8xf32>
    %50 = vector.shape_cast %49 : vector<8xf32> to vector<8x1xf32>
    %51 = vector.broadcast %50 : vector<8x1xf32> to vector<8x8xf32>
    %52 = arith.subf %48, %51 : vector<8x8xf32>
    %53 = math.exp %52 : vector<8x8xf32>
    %cst_35 = arith.constant dense<0.000000e+00> : vector<8xf32>
    %54 = vector.multi_reduction <add>, %53, %cst_35 [1] : vector<8x8xf32> to vector<8xf32>
    %55 = vector.shape_cast %54 : vector<8xf32> to vector<8x1xf32>
    %56 = tpu.reciprocal %55 {approx = true} : vector<8x1xf32> -> vector<8x1xf32>
    %57 = vector.broadcast %56 : vector<8x1xf32> to vector<8x8xf32>
    %58 = arith.mulf %53, %57 : vector<8x8xf32>
    %59 = vector.extract_strided_slice %43 {offsets = [0, 0], sizes = [8, 24], strides = [1, 1]} : vector<16x24xf32> to vector<8x24xf32>
    %cst_36 = arith.constant dense<0.000000e+00> : vector<8x24xf32>
    %60 = tpu.matmul %58, %59, %cst_36 {dimension_numbers = #tpu.dot_dimension_numbers<[1], [0], [0], [1], [0, 0, 1, 1], [], []>} : vector<8x8xf32>, vector<8x24xf32>, vector<8x24xf32> -> vector<8x24xf32>
    %61 = vector.extract_strided_slice %36 {offsets = [8, 0], sizes = [8, 24], strides = [1, 1]} : vector<16x24xf32> to vector<8x24xf32>
    %62 = vector.extract_strided_slice %38 {offsets = [8, 0], sizes = [8, 24], strides = [1, 1]} : vector<16x24xf32> to vector<8x24xf32>
    %cst_37 = arith.constant dense<0.000000e+00> : vector<8x8xf32>
    %63 = tpu.matmul %61, %62, %cst_37 {dimension_numbers = #tpu.dot_dimension_numbers<[1], [1], [0], [0], [0, 0, 1, 0], [], []>} : vector<8x24xf32>, vector<8x24xf32>, vector<8x8xf32> -> vector<8x8xf32>
    %cst_38 = arith.constant 1.300000e+00 : f32
    %64 = vector.broadcast %cst_38 : f32 to vector<8x8xf32>
    %65 = arith.mulf %64, %63 : vector<8x8xf32>
    %cst_39 = arith.constant dense<0xFF800000> : vector<8xf32>
    %66 = vector.multi_reduction <maximumf>, %65, %cst_39 [1] : vector<8x8xf32> to vector<8xf32>
    %67 = vector.shape_cast %66 : vector<8xf32> to vector<8x1xf32>
    %68 = vector.broadcast %67 : vector<8x1xf32> to vector<8x8xf32>
    %69 = arith.subf %65, %68 : vector<8x8xf32>
    %70 = math.exp %69 : vector<8x8xf32>
    %cst_40 = arith.constant dense<0.000000e+00> : vector<8xf32>
    %71 = vector.multi_reduction <add>, %70, %cst_40 [1] : vector<8x8xf32> to vector<8xf32>
    %72 = vector.shape_cast %71 : vector<8xf32> to vector<8x1xf32>
    %73 = tpu.reciprocal %72 {approx = true} : vector<8x1xf32> -> vector<8x1xf32>
    %74 = vector.broadcast %73 : vector<8x1xf32> to vector<8x8xf32>
    %75 = arith.mulf %70, %74 : vector<8x8xf32>
    %76 = vector.extract_strided_slice %43 {offsets = [8, 0], sizes = [8, 24], strides = [1, 1]} : vector<16x24xf32> to vector<8x24xf32>
    %cst_41 = arith.constant dense<0.000000e+00> : vector<8x24xf32>
    %77 = tpu.matmul %75, %76, %cst_41 {dimension_numbers = #tpu.dot_dimension_numbers<[1], [0], [0], [1], [0, 0, 1, 1], [], []>} : vector<8x8xf32>, vector<8x24xf32>, vector<8x24xf32> -> vector<8x24xf32>
    %78 = tpu.concatenate %60, %77 in 0 : vector<8x24xf32>, vector<8x24xf32> -> vector<16x24xf32>
    %c0_42 = arith.constant 0 : index
    %c0_43 = arith.constant 0 : index
    %79 = vector.load %arg10[%c0_42, %c0_43] : memref<24x24xf32, #tpu.memory_space<vmem>>, vector<24x24xf32>
    %cst_44 = arith.constant dense<0.000000e+00> : vector<16x24xf32>
    %80 = tpu.matmul %78, %79, %cst_44 {dimension_numbers = #tpu.dot_dimension_numbers<[1], [0], [0], [1], [0, 0, 1, 1], [], []>} : vector<16x24xf32>, vector<24x24xf32>, vector<16x24xf32> -> vector<16x24xf32>
    %81 = arith.addf %80, %37 : vector<16x24xf32>
    %cst_45 = arith.constant 0.999994993 : f32
    %82 = vector.broadcast %cst_45 : f32 to vector<16x24xf32>
    %83 = arith.mulf %81, %82 : vector<16x24xf32>
    %cst_46 = arith.constant 0.000000e+00 : f32
    %84 = vector.broadcast %cst_46 : f32 to vector<16x24xf32>
    %85 = arith.maximumf %83, %84 : vector<16x24xf32>
    %86 = vector.extract_strided_slice %35 {offsets = [0, 48], sizes = [16, 24], strides = [1, 1]} : vector<16x192xf32> to vector<16x24xf32>
    %87 = vector.extract_strided_slice %35 {offsets = [0, 72], sizes = [16, 24], strides = [1, 1]} : vector<16x192xf32> to vector<16x24xf32>
    %88 = vector.extract_strided_slice %25 {offsets = [0, 128], sizes = [16, 24], strides = [1, 1]} : vector<16x208xf32> to vector<16x24xf32>
    %89 = vector.extract_strided_slice %25 {offsets = [0, 152], sizes = [16, 24], strides = [1, 1]} : vector<16x208xf32> to vector<16x24xf32>
    %cst_47 = arith.constant 0.999994993 : f32
    %90 = vector.broadcast %cst_47 : f32 to vector<16x24xf32>
    %91 = arith.mulf %89, %90 : vector<16x24xf32>
    %cst_48 = arith.constant 0.000000e+00 : f32
    %92 = vector.broadcast %cst_48 : f32 to vector<16x24xf32>
    %93 = arith.maximumf %91, %92 : vector<16x24xf32>
    %94 = vector.extract_strided_slice %86 {offsets = [0, 0], sizes = [8, 24], strides = [1, 1]} : vector<16x24xf32> to vector<8x24xf32>
    %95 = vector.extract_strided_slice %88 {offsets = [0, 0], sizes = [8, 24], strides = [1, 1]} : vector<16x24xf32> to vector<8x24xf32>
    %cst_49 = arith.constant dense<0.000000e+00> : vector<8x8xf32>
    %96 = tpu.matmul %94, %95, %cst_49 {dimension_numbers = #tpu.dot_dimension_numbers<[1], [1], [0], [0], [0, 0, 1, 0], [], []>} : vector<8x24xf32>, vector<8x24xf32>, vector<8x8xf32> -> vector<8x8xf32>
    %cst_50 = arith.constant 1.300000e+00 : f32
    %97 = vector.broadcast %cst_50 : f32 to vector<8x8xf32>
    %98 = arith.mulf %97, %96 : vector<8x8xf32>
    %cst_51 = arith.constant dense<0xFF800000> : vector<8xf32>
    %99 = vector.multi_reduction <maximumf>, %98, %cst_51 [1] : vector<8x8xf32> to vector<8xf32>
    %100 = vector.shape_cast %99 : vector<8xf32> to vector<8x1xf32>
    %101 = vector.broadcast %100 : vector<8x1xf32> to vector<8x8xf32>
    %102 = arith.subf %98, %101 : vector<8x8xf32>
    %103 = math.exp %102 : vector<8x8xf32>
    %cst_52 = arith.constant dense<0.000000e+00> : vector<8xf32>
    %104 = vector.multi_reduction <add>, %103, %cst_52 [1] : vector<8x8xf32> to vector<8xf32>
    %105 = vector.shape_cast %104 : vector<8xf32> to vector<8x1xf32>
    %106 = tpu.reciprocal %105 {approx = true} : vector<8x1xf32> -> vector<8x1xf32>
    %107 = vector.broadcast %106 : vector<8x1xf32> to vector<8x8xf32>
    %108 = arith.mulf %103, %107 : vector<8x8xf32>
    %109 = vector.extract_strided_slice %93 {offsets = [0, 0], sizes = [8, 24], strides = [1, 1]} : vector<16x24xf32> to vector<8x24xf32>
    %cst_53 = arith.constant dense<0.000000e+00> : vector<8x24xf32>
    %110 = tpu.matmul %108, %109, %cst_53 {dimension_numbers = #tpu.dot_dimension_numbers<[1], [0], [0], [1], [0, 0, 1, 1], [], []>} : vector<8x8xf32>, vector<8x24xf32>, vector<8x24xf32> -> vector<8x24xf32>
    %111 = vector.extract_strided_slice %86 {offsets = [8, 0], sizes = [8, 24], strides = [1, 1]} : vector<16x24xf32> to vector<8x24xf32>
    %112 = vector.extract_strided_slice %88 {offsets = [8, 0], sizes = [8, 24], strides = [1, 1]} : vector<16x24xf32> to vector<8x24xf32>
    %cst_54 = arith.constant dense<0.000000e+00> : vector<8x8xf32>
    %113 = tpu.matmul %111, %112, %cst_54 {dimension_numbers = #tpu.dot_dimension_numbers<[1], [1], [0], [0], [0, 0, 1, 0], [], []>} : vector<8x24xf32>, vector<8x24xf32>, vector<8x8xf32> -> vector<8x8xf32>
    %cst_55 = arith.constant 1.300000e+00 : f32
    %114 = vector.broadcast %cst_55 : f32 to vector<8x8xf32>
    %115 = arith.mulf %114, %113 : vector<8x8xf32>
    %cst_56 = arith.constant dense<0xFF800000> : vector<8xf32>
    %116 = vector.multi_reduction <maximumf>, %115, %cst_56 [1] : vector<8x8xf32> to vector<8xf32>
    %117 = vector.shape_cast %116 : vector<8xf32> to vector<8x1xf32>
    %118 = vector.broadcast %117 : vector<8x1xf32> to vector<8x8xf32>
    %119 = arith.subf %115, %118 : vector<8x8xf32>
    %120 = math.exp %119 : vector<8x8xf32>
    %cst_57 = arith.constant dense<0.000000e+00> : vector<8xf32>
    %121 = vector.multi_reduction <add>, %120, %cst_57 [1] : vector<8x8xf32> to vector<8xf32>
    %122 = vector.shape_cast %121 : vector<8xf32> to vector<8x1xf32>
    %123 = tpu.reciprocal %122 {approx = true} : vector<8x1xf32> -> vector<8x1xf32>
    %124 = vector.broadcast %123 : vector<8x1xf32> to vector<8x8xf32>
    %125 = arith.mulf %120, %124 : vector<8x8xf32>
    %126 = vector.extract_strided_slice %93 {offsets = [8, 0], sizes = [8, 24], strides = [1, 1]} : vector<16x24xf32> to vector<8x24xf32>
    %cst_58 = arith.constant dense<0.000000e+00> : vector<8x24xf32>
    %127 = tpu.matmul %125, %126, %cst_58 {dimension_numbers = #tpu.dot_dimension_numbers<[1], [0], [0], [1], [0, 0, 1, 1], [], []>} : vector<8x8xf32>, vector<8x24xf32>, vector<8x24xf32> -> vector<8x24xf32>
    %128 = tpu.concatenate %110, %127 in 0 : vector<8x24xf32>, vector<8x24xf32> -> vector<16x24xf32>
    %c0_59 = arith.constant 0 : index
    %c0_60 = arith.constant 0 : index
    %129 = vector.load %arg11[%c0_59, %c0_60] : memref<24x24xf32, #tpu.memory_space<vmem>>, vector<24x24xf32>
    %cst_61 = arith.constant dense<0.000000e+00> : vector<16x24xf32>
    %130 = tpu.matmul %128, %129, %cst_61 {dimension_numbers = #tpu.dot_dimension_numbers<[1], [0], [0], [1], [0, 0, 1, 1], [], []>} : vector<16x24xf32>, vector<24x24xf32>, vector<16x24xf32> -> vector<16x24xf32>
    %131 = arith.addf %130, %87 : vector<16x24xf32>
    %cst_62 = arith.constant 0.999994993 : f32
    %132 = vector.broadcast %cst_62 : f32 to vector<16x24xf32>
    %133 = arith.mulf %131, %132 : vector<16x24xf32>
    %cst_63 = arith.constant 0.000000e+00 : f32
    %134 = vector.broadcast %cst_63 : f32 to vector<16x24xf32>
    %135 = arith.maximumf %133, %134 : vector<16x24xf32>
    %136 = vector.extract_strided_slice %30 {offsets = [0, 0], sizes = [16, 16], strides = [1, 1]} : vector<16x176xf32> to vector<16x16xf32>
    %137 = vector.extract_strided_slice %30 {offsets = [0, 16], sizes = [16, 16], strides = [1, 1]} : vector<16x176xf32> to vector<16x16xf32>
    %138 = vector.extract_strided_slice %35 {offsets = [0, 96], sizes = [16, 16], strides = [1, 1]} : vector<16x192xf32> to vector<16x16xf32>
    %139 = vector.extract_strided_slice %35 {offsets = [0, 112], sizes = [16, 16], strides = [1, 1]} : vector<16x192xf32> to vector<16x16xf32>
    %cst_64 = arith.constant 0.999994993 : f32
    %140 = vector.broadcast %cst_64 : f32 to vector<16x16xf32>
    %141 = arith.mulf %139, %140 : vector<16x16xf32>
    %cst_65 = arith.constant 0.000000e+00 : f32
    %142 = vector.broadcast %cst_65 : f32 to vector<16x16xf32>
    %143 = arith.maximumf %141, %142 : vector<16x16xf32>
    %144 = vector.extract_strided_slice %136 {offsets = [0, 0], sizes = [8, 16], strides = [1, 1]} : vector<16x16xf32> to vector<8x16xf32>
    %145 = vector.extract_strided_slice %138 {offsets = [0, 0], sizes = [8, 16], strides = [1, 1]} : vector<16x16xf32> to vector<8x16xf32>
    %cst_66 = arith.constant dense<0.000000e+00> : vector<8x8xf32>
    %146 = tpu.matmul %144, %145, %cst_66 {dimension_numbers = #tpu.dot_dimension_numbers<[1], [1], [0], [0], [0, 0, 1, 0], [], []>} : vector<8x16xf32>, vector<8x16xf32>, vector<8x8xf32> -> vector<8x8xf32>
    %cst_67 = arith.constant 1.300000e+00 : f32
    %147 = vector.broadcast %cst_67 : f32 to vector<8x8xf32>
    %148 = arith.mulf %147, %146 : vector<8x8xf32>
    %cst_68 = arith.constant dense<0xFF800000> : vector<8xf32>
    %149 = vector.multi_reduction <maximumf>, %148, %cst_68 [1] : vector<8x8xf32> to vector<8xf32>
    %150 = vector.shape_cast %149 : vector<8xf32> to vector<8x1xf32>
    %151 = vector.broadcast %150 : vector<8x1xf32> to vector<8x8xf32>
    %152 = arith.subf %148, %151 : vector<8x8xf32>
    %153 = math.exp %152 : vector<8x8xf32>
    %cst_69 = arith.constant dense<0.000000e+00> : vector<8xf32>
    %154 = vector.multi_reduction <add>, %153, %cst_69 [1] : vector<8x8xf32> to vector<8xf32>
    %155 = vector.shape_cast %154 : vector<8xf32> to vector<8x1xf32>
    %156 = tpu.reciprocal %155 {approx = true} : vector<8x1xf32> -> vector<8x1xf32>
    %157 = vector.broadcast %156 : vector<8x1xf32> to vector<8x8xf32>
    %158 = arith.mulf %153, %157 : vector<8x8xf32>
    %159 = vector.extract_strided_slice %143 {offsets = [0, 0], sizes = [8, 16], strides = [1, 1]} : vector<16x16xf32> to vector<8x16xf32>
    %cst_70 = arith.constant dense<0.000000e+00> : vector<8x16xf32>
    %160 = tpu.matmul %158, %159, %cst_70 {dimension_numbers = #tpu.dot_dimension_numbers<[1], [0], [0], [1], [0, 0, 1, 1], [], []>} : vector<8x8xf32>, vector<8x16xf32>, vector<8x16xf32> -> vector<8x16xf32>
    %161 = vector.extract_strided_slice %136 {offsets = [8, 0], sizes = [8, 16], strides = [1, 1]} : vector<16x16xf32> to vector<8x16xf32>
    %162 = vector.extract_strided_slice %138 {offsets = [8, 0], sizes = [8, 16], strides = [1, 1]} : vector<16x16xf32> to vector<8x16xf32>
    %cst_71 = arith.constant dense<0.000000e+00> : vector<8x8xf32>
    %163 = tpu.matmul %161, %162, %cst_71 {dimension_numbers = #tpu.dot_dimension_numbers<[1], [1], [0], [0], [0, 0, 1, 0], [], []>} : vector<8x16xf32>, vector<8x16xf32>, vector<8x8xf32> -> vector<8x8xf32>
    %cst_72 = arith.constant 1.300000e+00 : f32
    %164 = vector.broadcast %cst_72 : f32 to vector<8x8xf32>
    %165 = arith.mulf %164, %163 : vector<8x8xf32>
    %cst_73 = arith.constant dense<0xFF800000> : vector<8xf32>
    %166 = vector.multi_reduction <maximumf>, %165, %cst_73 [1] : vector<8x8xf32> to vector<8xf32>
    %167 = vector.shape_cast %166 : vector<8xf32> to vector<8x1xf32>
    %168 = vector.broadcast %167 : vector<8x1xf32> to vector<8x8xf32>
    %169 = arith.subf %165, %168 : vector<8x8xf32>
    %170 = math.exp %169 : vector<8x8xf32>
    %cst_74 = arith.constant dense<0.000000e+00> : vector<8xf32>
    %171 = vector.multi_reduction <add>, %170, %cst_74 [1] : vector<8x8xf32> to vector<8xf32>
    %172 = vector.shape_cast %171 : vector<8xf32> to vector<8x1xf32>
    %173 = tpu.reciprocal %172 {approx = true} : vector<8x1xf32> -> vector<8x1xf32>
    %174 = vector.broadcast %173 : vector<8x1xf32> to vector<8x8xf32>
    %175 = arith.mulf %170, %174 : vector<8x8xf32>
    %176 = vector.extract_strided_slice %143 {offsets = [8, 0], sizes = [8, 16], strides = [1, 1]} : vector<16x16xf32> to vector<8x16xf32>
    %cst_75 = arith.constant dense<0.000000e+00> : vector<8x16xf32>
    %177 = tpu.matmul %175, %176, %cst_75 {dimension_numbers = #tpu.dot_dimension_numbers<[1], [0], [0], [1], [0, 0, 1, 1], [], []>} : vector<8x8xf32>, vector<8x16xf32>, vector<8x16xf32> -> vector<8x16xf32>
    %178 = tpu.concatenate %160, %177 in 0 : vector<8x16xf32>, vector<8x16xf32> -> vector<16x16xf32>
    %c0_76 = arith.constant 0 : index
    %c0_77 = arith.constant 0 : index
    %179 = vector.load %arg12[%c0_76, %c0_77] : memref<16x16xf32, #tpu.memory_space<vmem>>, vector<16x16xf32>
    %cst_78 = arith.constant dense<0.000000e+00> : vector<16x16xf32>
    %180 = tpu.matmul %178, %179, %cst_78 {dimension_numbers = #tpu.dot_dimension_numbers<[1], [0], [0], [1], [0, 0, 1, 1], [], []>} : vector<16x16xf32>, vector<16x16xf32>, vector<16x16xf32> -> vector<16x16xf32>
    %181 = arith.addf %180, %137 : vector<16x16xf32>
    %cst_79 = arith.constant 0.999994993 : f32
    %182 = vector.broadcast %cst_79 : f32 to vector<16x16xf32>
    %183 = arith.mulf %181, %182 : vector<16x16xf32>
    %cst_80 = arith.constant 0.000000e+00 : f32
    %184 = vector.broadcast %cst_80 : f32 to vector<16x16xf32>
    %185 = arith.maximumf %183, %184 : vector<16x16xf32>
    %186 = vector.extract_strided_slice %30 {offsets = [0, 32], sizes = [16, 16], strides = [1, 1]} : vector<16x176xf32> to vector<16x16xf32>
    %187 = vector.extract_strided_slice %30 {offsets = [0, 48], sizes = [16, 16], strides = [1, 1]} : vector<16x176xf32> to vector<16x16xf32>
    %188 = vector.extract_strided_slice %25 {offsets = [0, 176], sizes = [16, 16], strides = [1, 1]} : vector<16x208xf32> to vector<16x16xf32>
    %189 = vector.extract_strided_slice %25 {offsets = [0, 192], sizes = [16, 16], strides = [1, 1]} : vector<16x208xf32> to vector<16x16xf32>
    %cst_81 = arith.constant 0.999994993 : f32
    %190 = vector.broadcast %cst_81 : f32 to vector<16x16xf32>
    %191 = arith.mulf %189, %190 : vector<16x16xf32>
    %cst_82 = arith.constant 0.000000e+00 : f32
    %192 = vector.broadcast %cst_82 : f32 to vector<16x16xf32>
    %193 = arith.maximumf %191, %192 : vector<16x16xf32>
    %194 = vector.extract_strided_slice %186 {offsets = [0, 0], sizes = [8, 16], strides = [1, 1]} : vector<16x16xf32> to vector<8x16xf32>
    %195 = vector.extract_strided_slice %188 {offsets = [0, 0], sizes = [8, 16], strides = [1, 1]} : vector<16x16xf32> to vector<8x16xf32>
    %cst_83 = arith.constant dense<0.000000e+00> : vector<8x8xf32>
    %196 = tpu.matmul %194, %195, %cst_83 {dimension_numbers = #tpu.dot_dimension_numbers<[1], [1], [0], [0], [0, 0, 1, 0], [], []>} : vector<8x16xf32>, vector<8x16xf32>, vector<8x8xf32> -> vector<8x8xf32>
    %cst_84 = arith.constant 1.300000e+00 : f32
    %197 = vector.broadcast %cst_84 : f32 to vector<8x8xf32>
    %198 = arith.mulf %197, %196 : vector<8x8xf32>
    %cst_85 = arith.constant dense<0xFF800000> : vector<8xf32>
    %199 = vector.multi_reduction <maximumf>, %198, %cst_85 [1] : vector<8x8xf32> to vector<8xf32>
    %200 = vector.shape_cast %199 : vector<8xf32> to vector<8x1xf32>
    %201 = vector.broadcast %200 : vector<8x1xf32> to vector<8x8xf32>
    %202 = arith.subf %198, %201 : vector<8x8xf32>
    %203 = math.exp %202 : vector<8x8xf32>
    %cst_86 = arith.constant dense<0.000000e+00> : vector<8xf32>
    %204 = vector.multi_reduction <add>, %203, %cst_86 [1] : vector<8x8xf32> to vector<8xf32>
    %205 = vector.shape_cast %204 : vector<8xf32> to vector<8x1xf32>
    %206 = tpu.reciprocal %205 {approx = true} : vector<8x1xf32> -> vector<8x1xf32>
    %207 = vector.broadcast %206 : vector<8x1xf32> to vector<8x8xf32>
    %208 = arith.mulf %203, %207 : vector<8x8xf32>
    %209 = vector.extract_strided_slice %193 {offsets = [0, 0], sizes = [8, 16], strides = [1, 1]} : vector<16x16xf32> to vector<8x16xf32>
    %cst_87 = arith.constant dense<0.000000e+00> : vector<8x16xf32>
    %210 = tpu.matmul %208, %209, %cst_87 {dimension_numbers = #tpu.dot_dimension_numbers<[1], [0], [0], [1], [0, 0, 1, 1], [], []>} : vector<8x8xf32>, vector<8x16xf32>, vector<8x16xf32> -> vector<8x16xf32>
    %211 = vector.extract_strided_slice %186 {offsets = [8, 0], sizes = [8, 16], strides = [1, 1]} : vector<16x16xf32> to vector<8x16xf32>
    %212 = vector.extract_strided_slice %188 {offsets = [8, 0], sizes = [8, 16], strides = [1, 1]} : vector<16x16xf32> to vector<8x16xf32>
    %cst_88 = arith.constant dense<0.000000e+00> : vector<8x8xf32>
    %213 = tpu.matmul %211, %212, %cst_88 {dimension_numbers = #tpu.dot_dimension_numbers<[1], [1], [0], [0], [0, 0, 1, 0], [], []>} : vector<8x16xf32>, vector<8x16xf32>, vector<8x8xf32> -> vector<8x8xf32>
    %cst_89 = arith.constant 1.300000e+00 : f32
    %214 = vector.broadcast %cst_89 : f32 to vector<8x8xf32>
    %215 = arith.mulf %214, %213 : vector<8x8xf32>
    %cst_90 = arith.constant dense<0xFF800000> : vector<8xf32>
    %216 = vector.multi_reduction <maximumf>, %215, %cst_90 [1] : vector<8x8xf32> to vector<8xf32>
    %217 = vector.shape_cast %216 : vector<8xf32> to vector<8x1xf32>
    %218 = vector.broadcast %217 : vector<8x1xf32> to vector<8x8xf32>
    %219 = arith.subf %215, %218 : vector<8x8xf32>
    %220 = math.exp %219 : vector<8x8xf32>
    %cst_91 = arith.constant dense<0.000000e+00> : vector<8xf32>
    %221 = vector.multi_reduction <add>, %220, %cst_91 [1] : vector<8x8xf32> to vector<8xf32>
    %222 = vector.shape_cast %221 : vector<8xf32> to vector<8x1xf32>
    %223 = tpu.reciprocal %222 {approx = true} : vector<8x1xf32> -> vector<8x1xf32>
    %224 = vector.broadcast %223 : vector<8x1xf32> to vector<8x8xf32>
    %225 = arith.mulf %220, %224 : vector<8x8xf32>
    %226 = vector.extract_strided_slice %193 {offsets = [8, 0], sizes = [8, 16], strides = [1, 1]} : vector<16x16xf32> to vector<8x16xf32>
    %cst_92 = arith.constant dense<0.000000e+00> : vector<8x16xf32>
    %227 = tpu.matmul %225, %226, %cst_92 {dimension_numbers = #tpu.dot_dimension_numbers<[1], [0], [0], [1], [0, 0, 1, 1], [], []>} : vector<8x8xf32>, vector<8x16xf32>, vector<8x16xf32> -> vector<8x16xf32>
    %228 = tpu.concatenate %210, %227 in 0 : vector<8x16xf32>, vector<8x16xf32> -> vector<16x16xf32>
    %c0_93 = arith.constant 0 : index
    %c0_94 = arith.constant 0 : index
    %229 = vector.load %arg13[%c0_93, %c0_94] : memref<16x16xf32, #tpu.memory_space<vmem>>, vector<16x16xf32>
    %cst_95 = arith.constant dense<0.000000e+00> : vector<16x16xf32>
    %230 = tpu.matmul %228, %229, %cst_95 {dimension_numbers = #tpu.dot_dimension_numbers<[1], [0], [0], [1], [0, 0, 1, 1], [], []>} : vector<16x16xf32>, vector<16x16xf32>, vector<16x16xf32> -> vector<16x16xf32>
    %231 = arith.addf %230, %187 : vector<16x16xf32>
    %cst_96 = arith.constant 0.999994993 : f32
    %232 = vector.broadcast %cst_96 : f32 to vector<16x16xf32>
    %233 = arith.mulf %231, %232 : vector<16x16xf32>
    %cst_97 = arith.constant 0.000000e+00 : f32
    %234 = vector.broadcast %cst_97 : f32 to vector<16x16xf32>
    %235 = arith.maximumf %233, %234 : vector<16x16xf32>
    %236 = vector.extract_strided_slice %25 {offsets = [0, 0], sizes = [16, 32], strides = [1, 1]} : vector<16x208xf32> to vector<16x32xf32>
    %237 = vector.extract_strided_slice %25 {offsets = [0, 32], sizes = [16, 32], strides = [1, 1]} : vector<16x208xf32> to vector<16x32xf32>
    %238 = vector.extract_strided_slice %30 {offsets = [0, 112], sizes = [16, 32], strides = [1, 1]} : vector<16x176xf32> to vector<16x32xf32>
    %239 = vector.extract_strided_slice %30 {offsets = [0, 144], sizes = [16, 32], strides = [1, 1]} : vector<16x176xf32> to vector<16x32xf32>
    %cst_98 = arith.constant 0.999994993 : f32
    %240 = vector.broadcast %cst_98 : f32 to vector<16x32xf32>
    %241 = arith.mulf %239, %240 : vector<16x32xf32>
    %cst_99 = arith.constant 0.000000e+00 : f32
    %242 = vector.broadcast %cst_99 : f32 to vector<16x32xf32>
    %243 = arith.maximumf %241, %242 : vector<16x32xf32>
    %244 = vector.extract_strided_slice %236 {offsets = [0, 0], sizes = [8, 32], strides = [1, 1]} : vector<16x32xf32> to vector<8x32xf32>
    %245 = vector.extract_strided_slice %238 {offsets = [0, 0], sizes = [8, 32], strides = [1, 1]} : vector<16x32xf32> to vector<8x32xf32>
    %cst_100 = arith.constant dense<0.000000e+00> : vector<8x8xf32>
    %246 = tpu.matmul %244, %245, %cst_100 {dimension_numbers = #tpu.dot_dimension_numbers<[1], [1], [0], [0], [0, 0, 1, 0], [], []>} : vector<8x32xf32>, vector<8x32xf32>, vector<8x8xf32> -> vector<8x8xf32>
    %cst_101 = arith.constant 1.300000e+00 : f32
    %247 = vector.broadcast %cst_101 : f32 to vector<8x8xf32>
    %248 = arith.mulf %247, %246 : vector<8x8xf32>
    %cst_102 = arith.constant dense<0xFF800000> : vector<8xf32>
    %249 = vector.multi_reduction <maximumf>, %248, %cst_102 [1] : vector<8x8xf32> to vector<8xf32>
    %250 = vector.shape_cast %249 : vector<8xf32> to vector<8x1xf32>
    %251 = vector.broadcast %250 : vector<8x1xf32> to vector<8x8xf32>
    %252 = arith.subf %248, %251 : vector<8x8xf32>
    %253 = math.exp %252 : vector<8x8xf32>
    %cst_103 = arith.constant dense<0.000000e+00> : vector<8xf32>
    %254 = vector.multi_reduction <add>, %253, %cst_103 [1] : vector<8x8xf32> to vector<8xf32>
    %255 = vector.shape_cast %254 : vector<8xf32> to vector<8x1xf32>
    %256 = tpu.reciprocal %255 {approx = true} : vector<8x1xf32> -> vector<8x1xf32>
    %257 = vector.broadcast %256 : vector<8x1xf32> to vector<8x8xf32>
    %258 = arith.mulf %253, %257 : vector<8x8xf32>
    %259 = vector.extract_strided_slice %243 {offsets = [0, 0], sizes = [8, 32], strides = [1, 1]} : vector<16x32xf32> to vector<8x32xf32>
    %cst_104 = arith.constant dense<0.000000e+00> : vector<8x32xf32>
    %260 = tpu.matmul %258, %259, %cst_104 {dimension_numbers = #tpu.dot_dimension_numbers<[1], [0], [0], [1], [0, 0, 1, 1], [], []>} : vector<8x8xf32>, vector<8x32xf32>, vector<8x32xf32> -> vector<8x32xf32>
    %261 = vector.extract_strided_slice %236 {offsets = [8, 0], sizes = [8, 32], strides = [1, 1]} : vector<16x32xf32> to vector<8x32xf32>
    %262 = vector.extract_strided_slice %238 {offsets = [8, 0], sizes = [8, 32], strides = [1, 1]} : vector<16x32xf32> to vector<8x32xf32>
    %cst_105 = arith.constant dense<0.000000e+00> : vector<8x8xf32>
    %263 = tpu.matmul %261, %262, %cst_105 {dimension_numbers = #tpu.dot_dimension_numbers<[1], [1], [0], [0], [0, 0, 1, 0], [], []>} : vector<8x32xf32>, vector<8x32xf32>, vector<8x8xf32> -> vector<8x8xf32>
    %cst_106 = arith.constant 1.300000e+00 : f32
    %264 = vector.broadcast %cst_106 : f32 to vector<8x8xf32>
    %265 = arith.mulf %264, %263 : vector<8x8xf32>
    %cst_107 = arith.constant dense<0xFF800000> : vector<8xf32>
    %266 = vector.multi_reduction <maximumf>, %265, %cst_107 [1] : vector<8x8xf32> to vector<8xf32>
    %267 = vector.shape_cast %266 : vector<8xf32> to vector<8x1xf32>
    %268 = vector.broadcast %267 : vector<8x1xf32> to vector<8x8xf32>
    %269 = arith.subf %265, %268 : vector<8x8xf32>
    %270 = math.exp %269 : vector<8x8xf32>
    %cst_108 = arith.constant dense<0.000000e+00> : vector<8xf32>
    %271 = vector.multi_reduction <add>, %270, %cst_108 [1] : vector<8x8xf32> to vector<8xf32>
    %272 = vector.shape_cast %271 : vector<8xf32> to vector<8x1xf32>
    %273 = tpu.reciprocal %272 {approx = true} : vector<8x1xf32> -> vector<8x1xf32>
    %274 = vector.broadcast %273 : vector<8x1xf32> to vector<8x8xf32>
    %275 = arith.mulf %270, %274 : vector<8x8xf32>
    %276 = vector.extract_strided_slice %243 {offsets = [8, 0], sizes = [8, 32], strides = [1, 1]} : vector<16x32xf32> to vector<8x32xf32>
    %cst_109 = arith.constant dense<0.000000e+00> : vector<8x32xf32>
    %277 = tpu.matmul %275, %276, %cst_109 {dimension_numbers = #tpu.dot_dimension_numbers<[1], [0], [0], [1], [0, 0, 1, 1], [], []>} : vector<8x8xf32>, vector<8x32xf32>, vector<8x32xf32> -> vector<8x32xf32>
    %278 = tpu.concatenate %260, %277 in 0 : vector<8x32xf32>, vector<8x32xf32> -> vector<16x32xf32>
    %c0_110 = arith.constant 0 : index
    %c0_111 = arith.constant 0 : index
    %279 = vector.load %arg14[%c0_110, %c0_111] : memref<32x32xf32, #tpu.memory_space<vmem>>, vector<32x32xf32>
    %cst_112 = arith.constant dense<0.000000e+00> : vector<16x32xf32>
    %280 = tpu.matmul %278, %279, %cst_112 {dimension_numbers = #tpu.dot_dimension_numbers<[1], [0], [0], [1], [0, 0, 1, 1], [], []>} : vector<16x32xf32>, vector<32x32xf32>, vector<16x32xf32> -> vector<16x32xf32>
    %281 = arith.addf %280, %237 : vector<16x32xf32>
    %cst_113 = arith.constant 0.999994993 : f32
    %282 = vector.broadcast %cst_113 : f32 to vector<16x32xf32>
    %283 = arith.mulf %281, %282 : vector<16x32xf32>
    %cst_114 = arith.constant 0.000000e+00 : f32
    %284 = vector.broadcast %cst_114 : f32 to vector<16x32xf32>
    %285 = arith.maximumf %283, %284 : vector<16x32xf32>
    %286 = vector.extract_strided_slice %25 {offsets = [0, 64], sizes = [16, 32], strides = [1, 1]} : vector<16x208xf32> to vector<16x32xf32>
    %287 = vector.extract_strided_slice %25 {offsets = [0, 96], sizes = [16, 32], strides = [1, 1]} : vector<16x208xf32> to vector<16x32xf32>
    %288 = vector.extract_strided_slice %35 {offsets = [0, 128], sizes = [16, 32], strides = [1, 1]} : vector<16x192xf32> to vector<16x32xf32>
    %289 = vector.extract_strided_slice %35 {offsets = [0, 160], sizes = [16, 32], strides = [1, 1]} : vector<16x192xf32> to vector<16x32xf32>
    %cst_115 = arith.constant 0.999994993 : f32
    %290 = vector.broadcast %cst_115 : f32 to vector<16x32xf32>
    %291 = arith.mulf %289, %290 : vector<16x32xf32>
    %cst_116 = arith.constant 0.000000e+00 : f32
    %292 = vector.broadcast %cst_116 : f32 to vector<16x32xf32>
    %293 = arith.maximumf %291, %292 : vector<16x32xf32>
    %294 = vector.extract_strided_slice %286 {offsets = [0, 0], sizes = [8, 32], strides = [1, 1]} : vector<16x32xf32> to vector<8x32xf32>
    %295 = vector.extract_strided_slice %288 {offsets = [0, 0], sizes = [8, 32], strides = [1, 1]} : vector<16x32xf32> to vector<8x32xf32>
    %cst_117 = arith.constant dense<0.000000e+00> : vector<8x8xf32>
    %296 = tpu.matmul %294, %295, %cst_117 {dimension_numbers = #tpu.dot_dimension_numbers<[1], [1], [0], [0], [0, 0, 1, 0], [], []>} : vector<8x32xf32>, vector<8x32xf32>, vector<8x8xf32> -> vector<8x8xf32>
    %cst_118 = arith.constant 1.300000e+00 : f32
    %297 = vector.broadcast %cst_118 : f32 to vector<8x8xf32>
    %298 = arith.mulf %297, %296 : vector<8x8xf32>
    %cst_119 = arith.constant dense<0xFF800000> : vector<8xf32>
    %299 = vector.multi_reduction <maximumf>, %298, %cst_119 [1] : vector<8x8xf32> to vector<8xf32>
    %300 = vector.shape_cast %299 : vector<8xf32> to vector<8x1xf32>
    %301 = vector.broadcast %300 : vector<8x1xf32> to vector<8x8xf32>
    %302 = arith.subf %298, %301 : vector<8x8xf32>
    %303 = math.exp %302 : vector<8x8xf32>
    %cst_120 = arith.constant dense<0.000000e+00> : vector<8xf32>
    %304 = vector.multi_reduction <add>, %303, %cst_120 [1] : vector<8x8xf32> to vector<8xf32>
    %305 = vector.shape_cast %304 : vector<8xf32> to vector<8x1xf32>
    %306 = tpu.reciprocal %305 {approx = true} : vector<8x1xf32> -> vector<8x1xf32>
    %307 = vector.broadcast %306 : vector<8x1xf32> to vector<8x8xf32>
    %308 = arith.mulf %303, %307 : vector<8x8xf32>
    %309 = vector.extract_strided_slice %293 {offsets = [0, 0], sizes = [8, 32], strides = [1, 1]} : vector<16x32xf32> to vector<8x32xf32>
    %cst_121 = arith.constant dense<0.000000e+00> : vector<8x32xf32>
    %310 = tpu.matmul %308, %309, %cst_121 {dimension_numbers = #tpu.dot_dimension_numbers<[1], [0], [0], [1], [0, 0, 1, 1], [], []>} : vector<8x8xf32>, vector<8x32xf32>, vector<8x32xf32> -> vector<8x32xf32>
    %311 = vector.extract_strided_slice %286 {offsets = [8, 0], sizes = [8, 32], strides = [1, 1]} : vector<16x32xf32> to vector<8x32xf32>
    %312 = vector.extract_strided_slice %288 {offsets = [8, 0], sizes = [8, 32], strides = [1, 1]} : vector<16x32xf32> to vector<8x32xf32>
    %cst_122 = arith.constant dense<0.000000e+00> : vector<8x8xf32>
    %313 = tpu.matmul %311, %312, %cst_122 {dimension_numbers = #tpu.dot_dimension_numbers<[1], [1], [0], [0], [0, 0, 1, 0], [], []>} : vector<8x32xf32>, vector<8x32xf32>, vector<8x8xf32> -> vector<8x8xf32>
    %cst_123 = arith.constant 1.300000e+00 : f32
    %314 = vector.broadcast %cst_123 : f32 to vector<8x8xf32>
    %315 = arith.mulf %314, %313 : vector<8x8xf32>
    %cst_124 = arith.constant dense<0xFF800000> : vector<8xf32>
    %316 = vector.multi_reduction <maximumf>, %315, %cst_124 [1] : vector<8x8xf32> to vector<8xf32>
    %317 = vector.shape_cast %316 : vector<8xf32> to vector<8x1xf32>
    %318 = vector.broadcast %317 : vector<8x1xf32> to vector<8x8xf32>
    %319 = arith.subf %315, %318 : vector<8x8xf32>
    %320 = math.exp %319 : vector<8x8xf32>
    %cst_125 = arith.constant dense<0.000000e+00> : vector<8xf32>
    %321 = vector.multi_reduction <add>, %320, %cst_125 [1] : vector<8x8xf32> to vector<8xf32>
    %322 = vector.shape_cast %321 : vector<8xf32> to vector<8x1xf32>
    %323 = tpu.reciprocal %322 {approx = true} : vector<8x1xf32> -> vector<8x1xf32>
    %324 = vector.broadcast %323 : vector<8x1xf32> to vector<8x8xf32>
    %325 = arith.mulf %320, %324 : vector<8x8xf32>
    %326 = vector.extract_strided_slice %293 {offsets = [8, 0], sizes = [8, 32], strides = [1, 1]} : vector<16x32xf32> to vector<8x32xf32>
    %cst_126 = arith.constant dense<0.000000e+00> : vector<8x32xf32>
    %327 = tpu.matmul %325, %326, %cst_126 {dimension_numbers = #tpu.dot_dimension_numbers<[1], [0], [0], [1], [0, 0, 1, 1], [], []>} : vector<8x8xf32>, vector<8x32xf32>, vector<8x32xf32> -> vector<8x32xf32>
    %328 = tpu.concatenate %310, %327 in 0 : vector<8x32xf32>, vector<8x32xf32> -> vector<16x32xf32>
    %c0_127 = arith.constant 0 : index
    %c0_128 = arith.constant 0 : index
    %329 = vector.load %arg15[%c0_127, %c0_128] : memref<32x32xf32, #tpu.memory_space<vmem>>, vector<32x32xf32>
    %cst_129 = arith.constant dense<0.000000e+00> : vector<16x32xf32>
    %330 = tpu.matmul %328, %329, %cst_129 {dimension_numbers = #tpu.dot_dimension_numbers<[1], [0], [0], [1], [0, 0, 1, 1], [], []>} : vector<16x32xf32>, vector<32x32xf32>, vector<16x32xf32> -> vector<16x32xf32>
    %331 = arith.addf %330, %287 : vector<16x32xf32>
    %cst_130 = arith.constant 0.999994993 : f32
    %332 = vector.broadcast %cst_130 : f32 to vector<16x32xf32>
    %333 = arith.mulf %331, %332 : vector<16x32xf32>
    %cst_131 = arith.constant 0.000000e+00 : f32
    %334 = vector.broadcast %cst_131 : f32 to vector<16x32xf32>
    %335 = arith.maximumf %333, %334 : vector<16x32xf32>
    %cst_132 = arith.constant 1.000000e+00 : f32
    %336 = vector.broadcast %cst_132 : f32 to vector<16x32xf32>
    %337 = arith.mulf %336, %285 : vector<16x32xf32>
    %cst_133 = arith.constant 1.000000e+00 : f32
    %338 = vector.broadcast %cst_133 : f32 to vector<16x32xf32>
    %339 = arith.mulf %338, %335 : vector<16x32xf32>
    %340 = arith.addf %337, %339 : vector<16x32xf32>
    %341 = arith.addf %340, %6 : vector<16x32xf32>
    %342 = vector.extract_strided_slice %341 {offsets = [0, 0], sizes = [8, 32], strides = [1, 1]} : vector<16x32xf32> to vector<8x32xf32>
    %343 = tpu.transpose %342, [1, 0] : vector<8x32xf32> -> vector<32x8xf32>
    %c0_134 = arith.constant 0 : index
    %c0_135 = arith.constant 0 : index
    %c0_136 = arith.constant 0 : index
    %344 = vector.load %arg16[%c0_134, %c0_135, %c0_136] : memref<2x32x8xf32, #tpu.memory_space<vmem>>, vector<1x32x8xf32>
    %345 = vector.shape_cast %344 : vector<1x32x8xf32> to vector<32x8xf32>
    %346 = vector.shape_cast %343 : vector<32x8xf32> to vector<1x32x8xf32>
    tpu.vector_store %arg16[%c0_134, %c0_135, %c0_136], %346 {strides = array<i32>} : memref<2x32x8xf32, #tpu.memory_space<vmem>>, vector<1x32x8xf32>,
    %347 = vector.extract_strided_slice %341 {offsets = [8, 0], sizes = [8, 32], strides = [1, 1]} : vector<16x32xf32> to vector<8x32xf32>
    %348 = tpu.transpose %347, [1, 0] : vector<8x32xf32> -> vector<32x8xf32>
    %c1_137 = arith.constant 1 : index
    %c0_138 = arith.constant 0 : index
    %c0_139 = arith.constant 0 : index
    %349 = vector.load %arg16[%c1_137, %c0_138, %c0_139] : memref<2x32x8xf32, #tpu.memory_space<vmem>>, vector<1x32x8xf32>
    %350 = vector.shape_cast %349 : vector<1x32x8xf32> to vector<32x8xf32>
    %351 = vector.shape_cast %348 : vector<32x8xf32> to vector<1x32x8xf32>
    tpu.vector_store %arg16[%c1_137, %c0_138, %c0_139], %351 {strides = array<i32>} : memref<2x32x8xf32, #tpu.memory_space<vmem>>, vector<1x32x8xf32>,
    %cst_140 = arith.constant 1.000000e+00 : f32
    %352 = vector.broadcast %cst_140 : f32 to vector<16x16xf32>
    %353 = arith.mulf %352, %185 : vector<16x16xf32>
    %cst_141 = arith.constant 1.000000e+00 : f32
    %354 = vector.broadcast %cst_141 : f32 to vector<16x16xf32>
    %355 = arith.mulf %354, %235 : vector<16x16xf32>
    %356 = arith.addf %353, %355 : vector<16x16xf32>
    %357 = arith.addf %356, %13 : vector<16x16xf32>
    %358 = vector.extract_strided_slice %357 {offsets = [0, 0], sizes = [8, 16], strides = [1, 1]} : vector<16x16xf32> to vector<8x16xf32>
    %359 = tpu.transpose %358, [1, 0] : vector<8x16xf32> -> vector<16x8xf32>
    %c0_142 = arith.constant 0 : index
    %c0_143 = arith.constant 0 : index
    %c0_144 = arith.constant 0 : index
    %360 = vector.load %arg17[%c0_142, %c0_143, %c0_144] : memref<2x16x8xf32, #tpu.memory_space<vmem>>, vector<1x16x8xf32>
    %361 = vector.shape_cast %360 : vector<1x16x8xf32> to vector<16x8xf32>
    %362 = vector.shape_cast %359 : vector<16x8xf32> to vector<1x16x8xf32>
    tpu.vector_store %arg17[%c0_142, %c0_143, %c0_144], %362 {strides = array<i32>} : memref<2x16x8xf32, #tpu.memory_space<vmem>>, vector<1x16x8xf32>,
    %363 = vector.extract_strided_slice %357 {offsets = [8, 0], sizes = [8, 16], strides = [1, 1]} : vector<16x16xf32> to vector<8x16xf32>
    %364 = tpu.transpose %363, [1, 0] : vector<8x16xf32> -> vector<16x8xf32>
    %c1_145 = arith.constant 1 : index
    %c0_146 = arith.constant 0 : index
    %c0_147 = arith.constant 0 : index
    %365 = vector.load %arg17[%c1_145, %c0_146, %c0_147] : memref<2x16x8xf32, #tpu.memory_space<vmem>>, vector<1x16x8xf32>
    %366 = vector.shape_cast %365 : vector<1x16x8xf32> to vector<16x8xf32>
    %367 = vector.shape_cast %364 : vector<16x8xf32> to vector<1x16x8xf32>
    tpu.vector_store %arg17[%c1_145, %c0_146, %c0_147], %367 {strides = array<i32>} : memref<2x16x8xf32, #tpu.memory_space<vmem>>, vector<1x16x8xf32>,
    %cst_148 = arith.constant 1.000000e+00 : f32
    %368 = vector.broadcast %cst_148 : f32 to vector<16x24xf32>
    %369 = arith.mulf %368, %85 : vector<16x24xf32>
    %cst_149 = arith.constant 1.000000e+00 : f32
    %370 = vector.broadcast %cst_149 : f32 to vector<16x24xf32>
    %371 = arith.mulf %370, %135 : vector<16x24xf32>
    %372 = arith.addf %369, %371 : vector<16x24xf32>
    %373 = arith.addf %372, %20 : vector<16x24xf32>
    %374 = vector.extract_strided_slice %373 {offsets = [0, 0], sizes = [8, 24], strides = [1, 1]} : vector<16x24xf32> to vector<8x24xf32>
    %375 = tpu.transpose %374, [1, 0] : vector<8x24xf32> -> vector<24x8xf32>
    %c0_150 = arith.constant 0 : index
    %c0_151 = arith.constant 0 : index
    %c0_152 = arith.constant 0 : index
    %376 = vector.load %arg18[%c0_150, %c0_151, %c0_152] : memref<2x24x8xf32, #tpu.memory_space<vmem>>, vector<1x24x8xf32>
    %377 = vector.shape_cast %376 : vector<1x24x8xf32> to vector<24x8xf32>
    %378 = vector.shape_cast %375 : vector<24x8xf32> to vector<1x24x8xf32>
    tpu.vector_store %arg18[%c0_150, %c0_151, %c0_152], %378 {strides = array<i32>} : memref<2x24x8xf32, #tpu.memory_space<vmem>>, vector<1x24x8xf32>,
    %379 = vector.extract_strided_slice %373 {offsets = [8, 0], sizes = [8, 24], strides = [1, 1]} : vector<16x24xf32> to vector<8x24xf32>
    %380 = tpu.transpose %379, [1, 0] : vector<8x24xf32> -> vector<24x8xf32>
    %c1_153 = arith.constant 1 : index
    %c0_154 = arith.constant 0 : index
    %c0_155 = arith.constant 0 : index
    %381 = vector.load %arg18[%c1_153, %c0_154, %c0_155] : memref<2x24x8xf32, #tpu.memory_space<vmem>>, vector<1x24x8xf32>
    %382 = vector.shape_cast %381 : vector<1x24x8xf32> to vector<24x8xf32>
    %383 = vector.shape_cast %380 : vector<24x8xf32> to vector<1x24x8xf32>
    tpu.vector_store %arg18[%c1_153, %c0_154, %c0_155], %383 {strides = array<i32>} : memref<2x24x8xf32, #tpu.memory_space<vmem>>, vector<1x24x8xf32>,
    return
  }
  func.func @transform_0(%arg0: i32) -> (i32, i32, i32) {
    %c0_i32 = arith.constant 0 : i32
    %c0_i32_0 = arith.constant 0 : i32
    %c0_i32_1 = arith.constant 0 : i32
    %c0_i32_2 = arith.constant 0 : i32
    return %c0_i32, %c0_i32_0, %c0_i32_1 : i32, i32, i32
  }
  func.func @transform_1(%arg0: i32) -> (i32, i32, i32) {
    %c0_i32 = arith.constant 0 : i32
    %c0_i32_0 = arith.constant 0 : i32
    %c0_i32_1 = arith.constant 0 : i32
    %c0_i32_2 = arith.constant 0 : i32
    return %c0_i32, %c0_i32_0, %c0_i32_1 : i32, i32, i32
  }
  func.func @transform_2(%arg0: i32) -> (i32, i32, i32) {
    %c0_i32 = arith.constant 0 : i32
    %c0_i32_0 = arith.constant 0 : i32
    %c0_i32_1 = arith.constant 0 : i32
    %c0_i32_2 = arith.constant 0 : i32
    return %c0_i32, %c0_i32_0, %c0_i32_1 : i32, i32, i32
  }
  func.func @transform_3(%arg0: i32) -> (i32, i32) {
    %c0_i32 = arith.constant 0 : i32
    %c0_i32_0 = arith.constant 0 : i32
    %c0_i32_1 = arith.constant 0 : i32
    return %c0_i32, %c0_i32_0 : i32, i32
  }
  func.func @transform_4(%arg0: i32) -> (i32, i32) {
    %c0_i32 = arith.constant 0 : i32
    %c0_i32_0 = arith.constant 0 : i32
    %c0_i32_1 = arith.constant 0 : i32
    return %c0_i32, %c0_i32_0 : i32, i32
  }
  func.func @transform_5(%arg0: i32) -> (i32, i32) {
    %c0_i32 = arith.constant 0 : i32
    %c0_i32_0 = arith.constant 0 : i32
    %c0_i32_1 = arith.constant 0 : i32
    return %c0_i32, %c0_i32_0 : i32, i32
  }
  func.func @transform_6(%arg0: i32) -> (i32, i32) {
    %c0_i32 = arith.constant 0 : i32
    %c0_i32_0 = arith.constant 0 : i32
    %c0_i32_1 = arith.constant 0 : i32
    return %c0_i32, %c0_i32_0 : i32, i32
  }
  func.func @transform_7(%arg0: i32) -> (i32, i32) {
    %c0_i32 = arith.constant 0 : i32
    %c0_i32_0 = arith.constant 0 : i32
    %c0_i32_1 = arith.constant 0 : i32
    return %c0_i32, %c0_i32_0 : i32, i32
  }
  func.func @transform_8(%arg0: i32) -> (i32, i32) {
    %c0_i32 = arith.constant 0 : i32
    %c0_i32_0 = arith.constant 0 : i32
    %c0_i32_1 = arith.constant 0 : i32
    return %c0_i32, %c0_i32_0 : i32, i32
  }
  func.func @transform_9(%arg0: i32) -> (i32, i32) {
    %c0_i32 = arith.constant 0 : i32
    %c0_i32_0 = arith.constant 0 : i32
    %c0_i32_1 = arith.constant 0 : i32
    return %c0_i32, %c0_i32_0 : i32, i32
  }
  func.func @transform_10(%arg0: i32) -> (i32, i32) {
    %c0_i32 = arith.constant 0 : i32
    %c0_i32_0 = arith.constant 0 : i32
    %c0_i32_1 = arith.constant 0 : i32
    return %c0_i32, %c0_i32_0 : i32, i32
  }
  func.func @transform_11(%arg0: i32) -> (i32, i32) {
    %c0_i32 = arith.constant 0 : i32
    %c0_i32_0 = arith.constant 0 : i32
    %c0_i32_1 = arith.constant 0 : i32
    return %c0_i32, %c0_i32_0 : i32, i32
  }
  func.func @transform_12(%arg0: i32) -> (i32, i32) {
    %c0_i32 = arith.constant 0 : i32
    %c0_i32_0 = arith.constant 0 : i32
    %c0_i32_1 = arith.constant 0 : i32
    return %c0_i32, %c0_i32_0 : i32, i32
  }
  func.func @transform_13(%arg0: i32) -> (i32, i32) {
    %c0_i32 = arith.constant 0 : i32
    %c0_i32_0 = arith.constant 0 : i32
    %c0_i32_1 = arith.constant 0 : i32
    return %c0_i32, %c0_i32_0 : i32, i32
  }
  func.func @transform_14(%arg0: i32) -> (i32, i32) {
    %c0_i32 = arith.constant 0 : i32
    %c0_i32_0 = arith.constant 0 : i32
    %c0_i32_1 = arith.constant 0 : i32
    return %c0_i32, %c0_i32_0 : i32, i32
  }
  func.func @transform_15(%arg0: i32) -> (i32, i32, i32) {
    %c0_i32 = arith.constant 0 : i32
    %c0_i32_0 = arith.constant 0 : i32
    %c0_i32_1 = arith.constant 0 : i32
    %c0_i32_2 = arith.constant 0 : i32
    return %c0_i32, %c0_i32_0, %c0_i32_1 : i32, i32, i32
  }
  func.func @transform_16(%arg0: i32) -> (i32, i32, i32) {
    %c0_i32 = arith.constant 0 : i32
    %c0_i32_0 = arith.constant 0 : i32
    %c0_i32_1 = arith.constant 0 : i32
    %c0_i32_2 = arith.constant 0 : i32
    return %c0_i32, %c0_i32_0, %c0_i32_1 : i32, i32, i32
  }
  func.func @transform_17(%arg0: i32) -> (i32, i32, i32) {
    %c0_i32 = arith.constant 0 : i32
    %c0_i32_0 = arith.constant 0 : i32
    %c0_i32_1 = arith.constant 0 : i32
    %c0_i32_2 = arith.constant 0 : i32
    return %c0_i32, %c0_i32_0, %c0_i32_1 : i32, i32, i32
  }
}

</mosaic_0001>

<bundles_post_ra>
// kernel: mgat_forward.1
= control target key start
LH: loop header
LB: loop body
LE: loop exit
PB: predicated region body
PF: predicated region fallthrough
CT: control target
= control target key end

     0   :  { %v3777_v2 = vmov 0.0   ;;  %vm386_vm0 = vcmask 130048   ;;  %vm488_vm1 = vcmask 195584   ;;  %v276_v25 = vlaneseq  ;;  %s3783_s25 = smov 32   ;;  %s3785_s18 = smov 96   ;;  %s4490_s1 = inlined_call_operand.vmem [shape: f32[2,16,8], index: 1, kind: input, shape index: {}]   ;;  %s4491_s5 = inlined_call_operand.vmem [shape: f32[16,176], index: 5, kind: input, shape index: {}]   ;;  %s4492_s7 = inlined_call_operand.vmem [shape: f32[24,192], index: 7, kind: input, shape index: {}]   ;;  %s4493_s2 = inlined_call_operand.vmem [shape: f32[2,24,8], index: 2, kind: input, shape index: {}]   ;;  %s4494_s6 = inlined_call_operand.vmem [shape: f32[1,176], index: 6, kind: input, shape index: {}]   ;;  %s4495_s3 = inlined_call_operand.vmem [shape: f32[32,208], index: 3, kind: input, shape index: {}]   ;;  %s4496_s8 = inlined_call_operand.vmem [shape: f32[1,192], index: 8, kind: input, shape index: {}]   ;;  %s4497_s0 = inlined_call_operand.vmem [shape: f32[2,32,8], index: 0, kind: input, shape index: {}]   ;;  %s4498_s4 = inlined_call_operand.vmem [shape: f32[1,208], index: 4, kind: input, shape index: {}]   ;;  %s4499_s9 = inlined_call_operand.vmem [shape: f32[24,24], index: 9, kind: input, shape index: {}]   ;;  %s4500_s10 = inlined_call_operand.vmem [shape: f32[24,24], index: 10, kind: input, shape index: {}]   ;;  %s4501_s11 = inlined_call_operand.vmem [shape: f32[16,16], index: 11, kind: input, shape index: {}]   ;;  %s4502_s12 = inlined_call_operand.vmem [shape: f32[16,16], index: 12, kind: input, shape index: {}]   ;;  %s4503_s13 = inlined_call_operand.vmem [shape: f32[32,32], index: 13, kind: input, shape index: {}]   ;;  %s4504_s14 = inlined_call_operand.vmem [shape: f32[32,32], index: 14, kind: input, shape index: {}]   ;;  %s4505_s16 = inlined_call_operand.vmem [shape: f32[2,16,8], index: 16, kind: output, shape index: {1}]   ;;  %s4506_s15 = inlined_call_operand.vmem [shape: f32[2,32,8], index: 15, kind: output, shape index: {0}]   ;;  %s4507_s17 = inlined_call_operand.vmem [shape: f32[2,24,8], index: 17, kind: output, shape index: {2}]  }
   0x1   :  { %4510 = sst [smem:[#allocation2_spill]] %s4490_s1  ;;  %457 = vmatprep.mubr.f32.mxu1 %v3777_v2  ;;  %357 = vmatprep.mubr.f32.mxu0 %v3777_v2  ;;  %v475_v9 = vld [vmem:[%s4492_s7 + $0x28] sm:$0xff]  ;;  %v195_v10 = vld [vmem:[%s4493_s2] sm:$0xff]  ;;  %v3400_v11 = vld [vmem:[%s4493_s2 + $0x18] sm:$0xff]  ;;  %vm3778_vm2 = vmmov 0   ;;  %vm286_vm3 = vcmask 261120  }
   0x2   :  { %4511 = sst [smem:[#allocation3_spill]] %s4491_s5  ;;  %v196_v12 = vld [vmem:[%s4493_s2 + $0x8] sm:$0xff]  ;;  %v3401_v13 = vld [vmem:[%s4493_s2 + $0x20] sm:$0xff]  ;;  %v197_v14 = vld [vmem:[%s4493_s2 + $0x10] sm:$0xff]  ;;  %v277_v26 = vshrl.u32 %v276_v25, 7  ;;  %vm655_vm4 = vcmask 64512  }
   0x3   :  { %s4512_s26 = sld [smem:[#allocation2_spill]]  ;;  %v3402_v15 = vld [vmem:[%s4493_s2 + $0x28] sm:$0xff]  ;;  %v474_v16 = vld [vmem:[%s4492_s7 + $0x20] sm:$0xff]  ;;  %v473_v18 = vld [vmem:[%s4492_s7 + $0x18] sm:$0xff] }
   0x4   :  { %s4513_s30 = sld [smem:[#allocation3_spill]]  ;;  %v472_v19 = vld [vmem:[%s4492_s7 + $0x10] sm:$0xff]  ;;  %v471_v21 = vld [vmem:[%s4492_s7 + $0x8] sm:$0xff]  ;;  %v470_v22 = vld [vmem:[%s4492_s7] sm:$0xff]  ;;  %v3960_v27 = vsub.s32 0, %v277_v26  ;;  %v4001_v42 = vsub.s32 1, %v277_v26 }
   0x5   :  { %v3965_v28 = vld [vmem:[%s4494_s6] sm:$0x3]  ;;  %v273_v30 = vld [vmem:[%s4495_s3 + $0x38] sm:$0xff]  ;;  %v272_v31 = vld [vmem:[%s4495_s3 + $0x30] sm:$0xff] }
   0x6   :  { %v379_v29 = vrot.slane %v3965_v28, %v3960_v27  ;;  %v271_v32 = vld [vmem:[%s4495_s3 + $0x28] sm:$0xff]  ;;  %317 = vmatprep.subr.mxu0 %v273_v30  ;;  %v270_v33 = vld [vmem:[%s4495_s3 + $0x20] sm:$0xff]  ;;  %v269_v35 = vld [vmem:[%s4495_s3 + $0x18] sm:$0xff] }
   0x7   :  { %318 = vmatpush1.msra.mxu0 %v272_v31  ;;  %v268_v37 = vld [vmem:[%s4495_s3 + $0x10] sm:$0xff]  ;;  %v267_v39 = vld [vmem:[%s4495_s3 + $0x8] sm:$0xff]  ;;  %v266_v40 = vld [vmem:[%s4495_s3] sm:$0xff] }
   0x8   :  { %319 = vmatprep.subr.mxu0 %v271_v32  ;;  %v476_v45 = vld [vmem:[%s4496_s8] sm:$0x3]  ;;  %v3395_v51 = vld [vmem:[%s4497_s0 + $0x28] sm:$0xff]  ;;  %v3396_v52 = vld [vmem:[%s4497_s0 + $0x30] sm:$0xff] }
   0x9   :  { %v126_v0 = vld [vmem:[%s4512_s26] sm:$0xff]  ;;  %v3398_v1 = vld [vmem:[%s4512_s26 + $0x10] sm:$0xff]  ;;  %v127_v4 = vld [vmem:[%s4512_s26 + $0x8] sm:$0xff]  ;;  %320 = vmatpush1.msra.mxu0 %v270_v33  ;;  %v4013_v46 = vrot.slane %v476_v45, %v4001_v42  ;;  %v481_v58 = vrot.slane %v476_v45, %v3960_v27 }
   0xa   :  { %128 = vxpose.xlu0.b32.start [1/2] (short) (narrow) %v126_v0, 8  ;;  %163 = vxpose.xlu1.b32.start [1/2] (short) (narrow) %v3398_v1, 8  ;;  %v373_v3 = vld [vmem:[%s4513_s30 + $0x18] sm:$0xff]  ;;  %v372_v6 = vld [vmem:[%s4513_s30 + $0x10] sm:$0xff]  ;;  %v371_v7 = vld [vmem:[%s4513_s30 + $0x8] sm:$0xff] }
   0xb   :  { %v3399_v5 = vld [vmem:[%s4512_s26 + $0x18] sm:$0xff]  ;;  %421 = vmatprep.subr.mxu1 %v373_v3  ;;  %v370_v8 = vld [vmem:[%s4513_s30] sm:$0xff]  ;;  %s3779_s30 = smov 64   ;;  %321 = vmatprep.subr.mxu0 %v269_v35  ;;  %v54_v55 = vld [vmem:[%s4497_s0 + $0x8] sm:$0xff] }
   0xc   :  { %422 = vmatpush1.msra.mxu1 %v372_v6  ;;  %322 = vmatpush1.msra.mxu0 %v268_v37  ;;  %v3394_v50 = vld [vmem:[%s4497_s0 + $0x20] sm:$0xff]  ;;  %v3397_v53 = vld [vmem:[%s4497_s0 + $0x38] sm:$0xff]  ;;  %v55_v56 = vld [vmem:[%s4497_s0 + $0x10] sm:$0xff] }
   0xd   :  { %423 = vmatprep.subr.mxu1 %v371_v7  ;;  %323 = vmatprep.subr.mxu0 %v267_v39  ;;  %v53_v54 = vld [vmem:[%s4497_s0] sm:$0xff]  ;;  %v56_v57 = vld [vmem:[%s4497_s0 + $0x18] sm:$0xff]  ;;  %s3780_s0 = smov 40   ;;  %v913_v45 = vld [vmem:[%s4499_s9 + $0x10] sm:$0xff] }
   0xe   :  { %129 = vxpose.xlu0.b32.end [2/2] (short) (narrow) %v127_v4, 8  ;;  %164 = vxpose.xlu1.b32.end [2/2] (short) (narrow) %v3399_v5, 8 }
   0xf   :  { %424 = vmatpush1.msra.mxu1 %v370_v8  ;;  %324 = vmatpush1.msra.mxu0 %v266_v40 }
  0x10   :  { %521 = vmatprep.subr.mxu1 %v475_v9  ;;  %3544 = vmatprep.subr.mxu0 %v3777_v2 }
  0x12   :  { %198 = vxpose.xlu0.b32.start [1/3] (short) (narrow) %v195_v10, 8  ;;  %234 = vxpose.xlu1.b32.start [1/3] (short) (narrow) %v3400_v11, 8  ;;  %v274_v10 = vld [vmem:[%s4498_s4] sm:$0x3]  ;;  %s3781_s4 = smov 80  }
  0x13   :  { %v279_v11 = vrot.slane %v274_v10, %v3960_v27 }
  0x16   :  { %199 = vxpose.xlu0.b32.cont [2/3] (short) (narrow) %v196_v12, 8  ;;  %235 = vxpose.xlu1.b32.cont [2/3] (short) (narrow) %v3401_v13, 8 }
  0x1a   :  { %200 = vxpose.xlu0.b32.end [3/3] (short) (narrow) %v197_v14, 8  ;;  %236 = vxpose.xlu1.b32.end [3/3] (short) (narrow) %v3402_v15, 8 }
  0x86   :  { %v3928_v17 = vpop.trf.xlu0  ;;  %v3938_v20 = vpop.trf.xlu1 }
  0x87   :  { %3405 = vmatmul.mubr.msk.f32.vlgmr.msra.gmra.mxu1 %vm386_vm0, %v3928_v17 }
  0x88   :  { %463 = vmatprep.mubr.f32.mxu1 %v3777_v2  ;;  %522 = vmatpush1.msra.mxu1 %v474_v16 }
  0x89   :  { %523 = vmatprep.subr.mxu1 %v473_v18 }
  0x8a   :  { %524 = vmatpush1.msra.mxu1 %v472_v19 }
  0x8b   :  { %3406 = vmatmul.mubr.msk.f32.gmra.mxu1 %vm386_vm0, %v3938_v20  ;;  %525 = vmatprep.subr.mxu1 %v471_v21 }
  0x8c   :  { %526 = vmatpush1.msra.mxu1 %v470_v22  ;;  %559 = vmatprep.mubr.f32.mxu1 %v3777_v2 }
  0x8d   :  { %3554 = vmatprep.subr.mxu1 %v3777_v2 }
  0x8e   :  { %v3951_v23 = vpop.trf.xlu0  ;;  %v3955_v24 = vpop.trf.xlu1 }
  0x8f   :  { %3407 = vmatmul.mubr.msk.f32.vlgmr.msra.gmra.mxu1 %vm488_vm1, %v3951_v23 }
  0x90   :  { %565 = vmatprep.mubr.f32.mxu1 %v3777_v2 }
  0x93   :  { %3408 = vmatmul.mubr.msk.f32.gmra.mxu1 %vm488_vm1, %v3955_v24 }
  0x94   :  { %3556 = vmatprep.mubr.msk.f32.mxu1 %vm3778_vm2, %v3777_v2 }
 0x147   :  { %v459_v34 = vpop.f32.mrf.mxu1 }
 0x148   :  { %v3986_v36 = vadd.f32 %v459_v34, %v379_v29 }
 0x149   :  { %v3991_v38 = vpop.f32.mrf.mxu1 }
 0x14a   :  { %577 = vrot.lane.b32.xlu0 %v3986_v36, %s3779_s30  ;;  %v572_v26 = vmul.f32 0.999995, %v3986_v36 }
 0x14b   :  { %v465_v41 = vpop.f32.mrf.mxu1 }
 0x14c   :  { %v4003_v43 = vadd.f32 %v465_v41, %v379_v29  ;;  %v574_v29 = vmax.f32 %v572_v26, 0.0 }
 0x14d   :  { %v4005_v44 = vpop.f32.mrf.mxu1 }
 0x14e   :  { %745 = vrot.lane.b32.xlu1 %v4003_v43, %s3779_s30  ;;  %v573_v8 = vmul.f32 0.999995, %v4003_v43 }
 0x14f   :  { %v561_v47 = vpop.f32.mrf.mxu1 }
 0x150   :  { %v4058_v1 = vadd.f32 %v561_v47, %v481_v58  ;;  %v575_v9 = vmax.f32 %v573_v8, 0.0 }
 0x151   :  { %v563_v48 = vpop.f32.mrf.mxu1 }
 0x152   :  { %v4017_v49 = vadd.f32 %v563_v48, %v4013_v46 }
 0x153   :  { %v567_v59 = vpop.f32.mrf.mxu1 }
 0x154   :  { %v4044_v61 = vadd.f32 %v567_v59, %v481_v58 }
 0x155   :  { %v4068_v3 = vpop.f32.mrf.mxu1 }
 0x168   :  { %94 = vxpose.xlu0.b32.start [1/4] (short) (narrow) %v3394_v50, 8 }
 0x16c   :  { %95 = vxpose.xlu0.b32.cont [2/4] (short) (narrow) %v3395_v51, 8 }
 0x170   :  { %96 = vxpose.xlu0.b32.cont [3/4] (short) (narrow) %v3396_v52, 8 }
 0x174   :  { %97 = vxpose.xlu0.b32.end [4/4] (short) (narrow) %v3397_v53, 8  ;;  %v283_v53 = vrot.slane %v274_v10, %v4001_v42 }
 0x177   :  { %57 = vxpose.xlu1.b32.start [1/4] (short) (narrow) %v53_v54, 8 }
 0x17b   :  { %58 = vxpose.xlu1.b32.cont [2/4] (short) (narrow) %v54_v55, 8 }
 0x17f   :  { %59 = vxpose.xlu1.b32.cont [3/4] (short) (narrow) %v55_v56, 8 }
 0x183   :  { %60 = vxpose.xlu1.b32.end [4/4] (short) (narrow) %v56_v57, 8 }
 0x1bc   :  { %v578_v62 = vpop.permute.xlu0 %577 }
 0x1c0   :  { %v746_v60 = vpop.permute.xlu1 %745 }
 0x1c1   :  { %3555 = vmatpush3.xpose.msk.msra.mxu1 %vm488_vm1, %v746_v60  ;;  %v912_v60 = vld [vmem:[%s4499_s9 + $0x8] sm:$0xff] }
 0x1c2   :  { %3564 = vmatprep.subr.mxu1 %v913_v45 }
 0x1c4   :  { %3557 = vmatmul.mubr.msk.f32.vlgmr.msra.gmra.mxu1 %vm488_vm1, %v4044_v61 }
 0x1c5   :  { %3565 = vmatpush3.msra.mxu1 %v913_v45 }
 0x1c6   :  { %3566 = vmatprep.subr.mxu1 %v912_v60 }
 0x1c7   :  { %3567 = vmatpush3.msra.mxu1 %v912_v60 }
 0x1e4   :  { %v4054_v0 = vpop.trf.xlu0 }
 0x1f3   :  { %v4049_v63 = vpop.trf.xlu1 }
 0x1f4   :  { %3403 = vmatmul.mubr.msk.f32.vlgmr.msra.gmra.mxu0 %vm286_vm3, %v4049_v63 }
 0x1f5   :  { %3545 = vmatpush3.xpose.msk.msra.mxu0 %vm488_vm1, %v578_v62  ;;  %363 = vmatprep.mubr.f32.mxu0 %v3777_v2  ;;  %v911_v62 = vld [vmem:[%s4499_s9] sm:$0xff]  ;;  %s3782_s9 = smov 104  }
 0x1f6   :  { %3549 = vmatprep.subr.mxu0 %v3777_v2  ;;  %3568 = vmatprep.subr.mxu1 %v911_v62 }
 0x1f7   :  { %3569 = vmatpush3.msra.mxu1 %v911_v62 }
 0x1f8   :  { %3404 = vmatmul.mubr.msk.f32.gmra.mxu0 %vm286_vm3, %v4054_v0  ;;  %3578 = vmatprep.subr.mxu1 %v3777_v2 }
 0x1f9   :  { %3546 = vmatprep.mubr.msk.f32.mxu0 %vm3778_vm2, %v3777_v2 }
 0x1fc   :  { %3547 = vmatmul.mubr.msk.f32.vlgmr.msra.gmra.mxu0 %vm488_vm1, %v4058_v1 }
 0x1fd   :  { %3551 = vmatprep.mubr.msk.f32.mxu0 %vm3778_vm2, %v3777_v2 }
 0x284   :  { %v818_v4 = vpop.f32.mrf.mxu1 }
 0x285   :  { %v822_v5 = vmul.f32 1.3, %v818_v4 }
 0x286   :  { %v3558_v6 = vpop.f32.mrf.mxu1 }
 0x287   :  { %v823_v7 = vsel %vm655_vm4, %v822_v5, -inf }
 0x288   :  { %824 = vmax.xlane.f32.xlu1 %v823_v7 }
 0x299   :  { %835 = vrot.lane.b32.xlu1 %v575_v9, %s3780_s0 }
 0x2b4   :  { %v359_v12 = vpop.f32.mrf.mxu0 }
 0x2b5   :  { %v4076_v13 = vadd.f32 %v359_v12, %v279_v11 }
 0x2b6   :  { %v361_v14 = vpop.f32.mrf.mxu0 }
 0x2b7   :  { %v4097_v56 = vadd.f32 %v361_v14, %v283_v53 }
 0x2b8   :  { %v365_v15 = vpop.f32.mrf.mxu0 }
 0x2b9   :  { %v4078_v16 = vadd.f32 %v365_v15, %v279_v11 }
 0x2ba   :  { %v367_v18 = vpop.f32.mrf.mxu0 }
 0x2bb   :  { %v4105_v57 = vadd.f32 %v367_v18, %v283_v53 }
 0x2bc   :  { %v650_v19 = vpop.f32.mrf.mxu0 }
 0x2bd   :  { %v654_v21 = vmul.f32 1.3, %v650_v19  ;;  %v4127_v19 = vmul.f32 0.999995, %v4105_v57 }
 0x2be   :  { %v3548_v22 = vpop.f32.mrf.mxu0 }
 0x2bf   :  { %v656_v25 = vsel %vm655_vm4, %v654_v21, -inf }
 0x2c0   :  { %657 = vmax.xlane.f32.xlu0 %v656_v25 }
 0x2d6   :  { %668 = vrot.lane.b32.xlu0 %v574_v29, %s3780_s0 }
 0x2da   :  { %1175 = vrot.lane.b32.xlu0 %v4044_v61, %s3781_s4 }
 0x311   :  { %v825_v27 = vpop.xlane.xlu1 %824 }
 0x312   :  { %v826_v30 = vsub.f32 %v822_v5, %v825_v27 }
 0x314   :  { %v827_v33 = vmul.f32 1.442695, %v826_v30 }
 0x315   :  { %v836_v47 = vpop.permute.xlu1 %835 }
 0x349   :  { %v658_v31 = vpop.xlane.xlu0 %657 }
 0x34a   :  { %v659_v32 = vsub.f32 %v654_v21, %v658_v31  ;;  %v1008_v21 = vmax.f32 %v4127_v19, 0.0  ;;  %v383_v19 = vrot.slane %v3965_v28, %v4001_v42 }
 0x34c   :  { %v660_v34 = vmul.f32 1.442695, %v659_v32 }
 0x34d   :  { %v669_v35 = vpop.permute.xlu0 %668 }
 0x34e   :  { %3729 = vpow2.f32 %v660_v34  ;;  %3550 = vmatpush3.msra.mxu0 %v669_v35  ;;  %v4136_v35 = vmul.f32 0.999995, %v4097_v56 }
 0x34f   :  { %3559 = vmatprep.subr.mxu0 %v3777_v2  ;;  %3731 = vpow2.f32 %v827_v33 }
 0x351   :  { %v1176_v59 = vpop.permute.xlu0 %1175 }
 0x35b   :  { %v3730_v37 = vpop.eup %3729 }
 0x35c   :  { %v662_v39 = vsel %vm655_vm4, %v3730_v37, 0.0  ;;  %v3732_v40 = vpop.eup %3731 }
 0x35d   :  { %663 = vadd.xlane.f32.xlu1 %v662_v39  ;;  %v829_v41 = vsel %vm655_vm4, %v3732_v40, 0.0  ;;  %v1343_v39 = vld [vmem:[%s4500_s10 + $0x10] sm:$0xff] }
 0x361   :  { %830 = vadd.xlane.f32.xlu1 %v829_v41 }
 0x372   :  { %1009 = vrot.lane.b32.xlu1 %v4058_v1, %s3781_s4 }
 0x3e6   :  { %v664_v48 = vpop.xlane.xlu1 %663 }
 0x3e7   :  { %3733 = vrcp.f32 %v664_v48 }
 0x3ea   :  { %v831_v50 = vpop.xlane.xlu1 %830 }
 0x3eb   :  { %3735 = vrcp.f32 %v831_v50 }
 0x3ee   :  { %v1010_v58 = vpop.permute.xlu1 %1009 }
 0x3f4   :  { %v3734_v51 = vpop.eup %3733 }
 0x3f5   :  { %v666_v52 = vmul.f32 %v3734_v51, %v3730_v37  ;;  %v1007_v37 = vmax.f32 %v4136_v35, 0.0 }
 0x3f7   :  { %3552 = vmatmul.mubr.msk.f32.vlgmr.msra.gmra.mxu0 %vm655_vm4, %v666_v52 }
 0x3f8   :  { %v3736_v54 = vpop.eup %3735  ;;  %3560 = vmatpush3.msra.mxu0 %v836_v47  ;;  %3561 = vmatprep.mubr.msk.f32.mxu0 %vm3778_vm2, %v3777_v2 }
 0x3f9   :  { %3573 = vmatprep.subr.mxu0 %v3777_v2  ;;  %v833_v55 = vmul.f32 %v3736_v54, %v3732_v40 }
 0x3fb   :  { %3562 = vmatmul.mubr.msk.f32.vlgmr.msra.gmra.mxu0 %vm655_vm4, %v833_v55  ;;  %v1342_v55 = vld [vmem:[%s4500_s10 + $0x8] sm:$0xff] }
 0x3fc   :  { %3574 = vmatpush3.xpose.msk.msra.mxu0 %vm488_vm1, %v4097_v56  ;;  %3575 = vmatprep.mubr.msk.f32.mxu0 %vm3778_vm2, %v3777_v2 }
 0x3fd   :  { %3583 = vmatprep.subr.mxu0 %v3777_v2 }
 0x3ff   :  { %3576 = vmatmul.mubr.msk.f32.vlgmr.msra.gmra.mxu0 %vm488_vm1, %v1010_v58  ;;  %v1341_v58 = vld [vmem:[%s4500_s10] sm:$0xff]  ;;  %s3784_s10 = smov 16  }
 0x400   :  { %3584 = vmatpush3.xpose.msk.msra.mxu0 %vm488_vm1, %v4105_v57  ;;  %3585 = vmatprep.mubr.msk.f32.mxu0 %vm3778_vm2, %v3777_v2 }
 0x401   :  { %3593 = vmatprep.subr.mxu0 %v1343_v39 }
 0x403   :  { %3586 = vmatmul.mubr.msk.f32.vlgmr.msra.gmra.mxu0 %vm488_vm1, %v1176_v59 }
 0x404   :  { %3594 = vmatpush3.msra.mxu0 %v1343_v39 }
 0x405   :  { %3595 = vmatprep.subr.mxu0 %v1342_v55 }
 0x406   :  { %3596 = vmatpush3.msra.mxu0 %v1342_v55 }
 0x407   :  { %3597 = vmatprep.subr.mxu0 %v1341_v58 }
 0x408   :  { %3598 = vmatpush3.msra.mxu0 %v1341_v58 }
 0x409   :  { %3607 = vmatprep.subr.mxu0 %v3777_v2 }
 0x4b7   :  { %v740_v4 = vpop.f32.mrf.mxu0 }
 0x4b8   :  { %3570 = vmatprep.mubr.msk.f32.mxu1 %vm488_vm1, %v740_v4 }
 0x4b9   :  { %v3553_v5 = vpop.f32.mrf.mxu0 }
 0x4bb   :  { %v907_v6 = vpop.f32.mrf.mxu0 }
 0x4bc   :  { %3571 = vmatmul.mubr.msk.f32.vlgmr.msra.gmra.mxu1 %vm488_vm1, %v907_v6 }
 0x4bd   :  { %v3563_v7 = vpop.f32.mrf.mxu0  ;;  %3580 = vmatprep.mubr.msk.f32.mxu1 %vm3778_vm2, %v3777_v2 }
 0x4bf   :  { %v1082_v8 = vpop.f32.mrf.mxu0 }
 0x4c0   :  { %v1086_v9 = vmul.f32 1.3, %v1082_v8 }
 0x4c1   :  { %v3577_v10 = vpop.f32.mrf.mxu0 }
 0x4c2   :  { %v1087_v11 = vsel %vm655_vm4, %v1086_v9, -inf }
 0x4c3   :  { %1088 = vmax.xlane.f32.xlu1 %v1087_v11  ;;  %v1248_v12 = vpop.f32.mrf.mxu0 }
 0x4c4   :  { %v1252_v14 = vmul.f32 1.3, %v1248_v12 }
 0x4c5   :  { %v3587_v15 = vpop.f32.mrf.mxu0 }
 0x4c6   :  { %v1253_v18 = vsel %vm655_vm4, %v1252_v14, -inf }
 0x4c7   :  { %1254 = vmax.xlane.f32.xlu0 %v1253_v18  ;;  %v1436_v18 = vmul.f32 0.999995, %v4044_v61 }
 0x4d4   :  { %1265 = vrot.lane.b32.xlu1 %v1008_v21, %s3782_s9 }
 0x54c   :  { %v1089_v22 = vpop.xlane.xlu1 %1088 }
 0x54d   :  { %v1090_v25 = vsub.f32 %v1086_v9, %v1089_v22  ;;  %v1438_v22 = vmax.f32 %v1436_v18, 0.0 }
 0x54f   :  { %v1091_v26 = vmul.f32 1.442695, %v1090_v25 }
 0x550   :  { %v1255_v29 = vpop.xlane.xlu0 %1254  ;;  %v1266_v40 = vpop.permute.xlu1 %1265 }
 0x551   :  { %3737 = vpow2.f32 %v1091_v26  ;;  %v1256_v27 = vsub.f32 %v1252_v14, %v1255_v29 }
 0x553   :  { %v1257_v30 = vmul.f32 1.442695, %v1256_v27 }
 0x555   :  { %3739 = vpow2.f32 %v1257_v30 }
 0x55e   :  { %v3738_v31 = vpop.eup %3737 }
 0x55f   :  { %v1093_v32 = vsel %vm655_vm4, %v3738_v31, 0.0 }
 0x560   :  { %1094 = vadd.xlane.f32.xlu0 %v1093_v32 }
 0x562   :  { %v3740_v33 = vpop.eup %3739 }
 0x563   :  { %v1259_v34 = vsel %vm655_vm4, %v3740_v33, 0.0 }
 0x564   :  { %1260 = vadd.xlane.f32.xlu1 %v1259_v34 }
 0x575   :  { %1439 = vrot.lane.b32.xlu1 %v4058_v1, %s3783_s25 }
 0x576   :  { %1099 = vrot.lane.b32.xlu0 %v1007_v37, %s3782_s9 }
 0x57a   :  { %1604 = vrot.lane.b32.xlu0 %v4044_v61, %s3783_s25 }
 0x57c   :  { %v4173_v59 = vpop.f32.mrf.mxu1 }
 0x57e   :  { %v4175_v60 = vpop.f32.mrf.mxu1 }
 0x5e9   :  { %v1095_v41 = vpop.xlane.xlu0 %1094 }
 0x5ea   :  { %3741 = vrcp.f32 %v1095_v41 }
 0x5ed   :  { %v1261_v45 = vpop.xlane.xlu1 %1260  ;;  %v1100_v47 = vpop.permute.xlu0 %1099 }
 0x5ee   :  { %3743 = vrcp.f32 %v1261_v45  ;;  %3579 = vmatpush3.msra.mxu1 %v1100_v47 }
 0x5ef   :  { %3588 = vmatprep.subr.mxu1 %v3777_v2 }
 0x5f1   :  { %v1440_v53 = vpop.permute.xlu1 %1439  ;;  %v1605_v54 = vpop.permute.xlu0 %1604 }
 0x5f7   :  { %v3742_v48 = vpop.eup %3741 }
 0x5f8   :  { %v1097_v50 = vmul.f32 %v3742_v48, %v3738_v31 }
 0x5fa   :  { %3581 = vmatmul.mubr.msk.f32.vlgmr.msra.gmra.mxu1 %vm655_vm4, %v1097_v50 }
 0x5fb   :  { %v3744_v51 = vpop.eup %3743  ;;  %3589 = vmatpush3.msra.mxu1 %v1266_v40  ;;  %3590 = vmatprep.mubr.msk.f32.mxu1 %vm3778_vm2, %v3777_v2  ;;  %v1435_v40 = vmul.f32 0.999995, %v4058_v1 }
 0x5fc   :  { %3602 = vmatprep.subr.mxu1 %v3777_v2  ;;  %v1263_v52 = vmul.f32 %v3744_v51, %v3740_v33 }
 0x5fd   :  { %v1437_v41 = vmax.f32 %v1435_v40, 0.0 }
 0x5fe   :  { %3591 = vmatmul.mubr.msk.f32.vlgmr.msra.gmra.mxu1 %vm655_vm4, %v1263_v52 }
 0x5ff   :  { %3603 = vmatpush3.xpose.msk.msra.mxu1 %vm386_vm0, %v1440_v53  ;;  %3604 = vmatprep.mubr.msk.f32.mxu1 %vm3778_vm2, %v3777_v2 }
 0x600   :  { %3612 = vmatprep.subr.mxu1 %v3777_v2 }
 0x602   :  { %3605 = vmatmul.mubr.msk.f32.vlgmr.msra.gmra.mxu1 %vm386_vm0, %v3986_v36 }
 0x603   :  { %3613 = vmatpush3.xpose.msk.msra.mxu1 %vm386_vm0, %v1605_v54  ;;  %3614 = vmatprep.mubr.msk.f32.mxu1 %vm3778_vm2, %v3777_v2 }
 0x606   :  { %3615 = vmatmul.mubr.msk.f32.vlgmr.msra.gmra.mxu1 %vm386_vm0, %v4003_v43 }
 0x6ba   :  { %v1171_v62 = vpop.f32.mrf.mxu1 }
 0x6bb   :  { %3599 = vmatprep.mubr.msk.f32.mxu0 %vm488_vm1, %v1171_v62  ;;  %v1770_v62 = vld [vmem:[%s4501_s11 + $0x8] sm:$0xff] }
 0x6bc   :  { %v3582_v4 = vpop.f32.mrf.mxu1  ;;  %3622 = vmatprep.subr.mxu1 %v1770_v62 }
 0x6bd   :  { %v1769_v4 = vld [vmem:[%s4501_s11] sm:$0xff]  ;;  %3623 = vmatpush3.msra.mxu1 %v1770_v62 }
 0x6be   :  { %v1337_v5 = vpop.f32.mrf.mxu1  ;;  %3624 = vmatprep.subr.mxu1 %v1769_v4 }
 0x6bf   :  { %3600 = vmatmul.mubr.msk.f32.vlgmr.msra.gmra.mxu0 %vm488_vm1, %v1337_v5  ;;  %3625 = vmatpush3.msra.mxu1 %v1769_v4 }
 0x6c0   :  { %v3592_v6 = vpop.f32.mrf.mxu1  ;;  %3609 = vmatprep.mubr.msk.f32.mxu0 %vm3778_vm2, %v3777_v2  ;;  %3634 = vmatprep.subr.mxu1 %v3777_v2 }
 0x6c2   :  { %v1511_v7 = vpop.f32.mrf.mxu1 }
 0x6c3   :  { %v1515_v8 = vmul.f32 1.3, %v1511_v7 }
 0x6c4   :  { %v3606_v9 = vpop.f32.mrf.mxu1 }
 0x6c5   :  { %v1516_v10 = vsel %vm655_vm4, %v1515_v8, -inf }
 0x6c6   :  { %1517 = vmax.xlane.f32.xlu1 %v1516_v10  ;;  %v1676_v11 = vpop.f32.mrf.mxu1 }
 0x6c7   :  { %v1680_v12 = vmul.f32 1.3, %v1676_v11 }
 0x6c8   :  { %v3616_v14 = vpop.f32.mrf.mxu1 }
 0x6c9   :  { %v1681_v15 = vsel %vm655_vm4, %v1680_v12, -inf }
 0x6ca   :  { %1682 = vmax.xlane.f32.xlu0 %v1681_v15 }
 0x6d7   :  { %1693 = vrot.lane.b32.xlu1 %v1438_v22, %s3784_s10 }
 0x6db   :  { %1864 = vrot.lane.b32.xlu1 %v4097_v56, %s3781_s4 }
 0x74f   :  { %v1518_v25 = vpop.xlane.xlu1 %1517 }
 0x750   :  { %v1519_v26 = vsub.f32 %v1515_v8, %v1518_v25 }
 0x752   :  { %v1520_v29 = vmul.f32 1.442695, %v1519_v26 }
 0x753   :  { %v1683_v27 = vpop.xlane.xlu0 %1682  ;;  %v1694_v56 = vpop.permute.xlu1 %1693 }
 0x754   :  { %3745 = vpow2.f32 %v1520_v29  ;;  %v1684_v30 = vsub.f32 %v1680_v12, %v1683_v27 }
 0x756   :  { %v1685_v31 = vmul.f32 1.442695, %v1684_v30 }
 0x757   :  { %v1865_v45 = vpop.permute.xlu1 %1864 }
 0x758   :  { %3747 = vpow2.f32 %v1685_v31 }
 0x761   :  { %v3746_v32 = vpop.eup %3745 }
 0x762   :  { %v1522_v33 = vsel %vm655_vm4, %v3746_v32, 0.0 }
 0x763   :  { %1523 = vadd.xlane.f32.xlu0 %v1522_v33 }
 0x765   :  { %v3748_v34 = vpop.eup %3747 }
 0x766   :  { %v1687_v39 = vsel %vm655_vm4, %v3748_v34, 0.0 }
 0x767   :  { %1688 = vadd.xlane.f32.xlu1 %v1687_v39 }
 0x778   :  { %2030 = vrot.lane.b32.xlu1 %v4105_v57, %s3781_s4 }
 0x779   :  { %1528 = vrot.lane.b32.xlu0 %v1437_v41, %s3784_s10 }
 0x77d   :  { %1862 = vrot.lane.b32.xlu0 %v3986_v36, %s3785_s18 }
 0x77f   :  { %v4219_v5 = vpop.f32.mrf.mxu0 }
 0x781   :  { %2028 = vrot.lane.b32.xlu0 %v4003_v43, %s3785_s18  ;;  %v4221_v6 = vpop.f32.mrf.mxu0 }
 0x7ec   :  { %v1524_v47 = vpop.xlane.xlu0 %1523 }
 0x7ed   :  { %3749 = vrcp.f32 %v1524_v47 }
 0x7f0   :  { %v1689_v48 = vpop.xlane.xlu1 %1688  ;;  %v1529_v50 = vpop.permute.xlu0 %1528 }
 0x7f1   :  { %3751 = vrcp.f32 %v1689_v48  ;;  %3608 = vmatpush3.msra.mxu0 %v1529_v50 }
 0x7f2   :  { %3617 = vmatprep.subr.mxu0 %v3777_v2 }
 0x7f4   :  { %v1863_v54 = vpop.permute.xlu0 %1862  ;;  %v2031_v55 = vpop.permute.xlu1 %2030 }
 0x7f8   :  { %v2029_v58 = vpop.permute.xlu0 %2028 }
 0x7fa   :  { %v3750_v57 = vpop.eup %3749 }
 0x7fb   :  { %v1526_v51 = vmul.f32 %v3750_v57, %v3746_v32 }
 0x7fd   :  { %3610 = vmatmul.mubr.msk.f32.vlgmr.msra.gmra.mxu0 %vm655_vm4, %v1526_v51 }
 0x7fe   :  { %v3752_v52 = vpop.eup %3751  ;;  %3618 = vmatpush3.msra.mxu0 %v1694_v56  ;;  %3619 = vmatprep.mubr.msk.f32.mxu0 %vm3778_vm2, %v3777_v2  ;;  %v4249_v56 = vadd.f32 %v4005_v44, %v383_v19 }
 0x7ff   :  { %3629 = vmatprep.subr.mxu0 %v3777_v2  ;;  %v1691_v53 = vmul.f32 %v3752_v52, %v3748_v34 }
 0x801   :  { %3620 = vmatmul.mubr.msk.f32.vlgmr.msra.gmra.mxu0 %vm655_vm4, %v1691_v53 }
 0x802   :  { %3630 = vmatpush3.xpose.msk.msra.mxu0 %vm386_vm0, %v1865_v45  ;;  %3631 = vmatprep.mubr.msk.f32.mxu0 %vm3778_vm2, %v3777_v2 }
 0x803   :  { %3639 = vmatprep.subr.mxu0 %v3777_v2 }
 0x805   :  { %3632 = vmatmul.mubr.msk.f32.vlgmr.msra.gmra.mxu0 %vm386_vm0, %v1863_v54  ;;  %v2195_v54 = vld [vmem:[%s4502_s12 + $0x8] sm:$0xff] }
 0x806   :  { %3640 = vmatpush3.xpose.msk.msra.mxu0 %vm386_vm0, %v2031_v55  ;;  %3641 = vmatprep.mubr.msk.f32.mxu0 %vm3778_vm2, %v3777_v2  ;;  %v2194_v55 = vld [vmem:[%s4502_s12] sm:$0xff]  ;;  %s3786_s12 = smov 112  }
 0x807   :  { %3649 = vmatprep.subr.mxu0 %v2195_v54 }
 0x809   :  { %3642 = vmatmul.mubr.msk.f32.vlgmr.msra.gmra.mxu0 %vm386_vm0, %v2029_v58 }
 0x80a   :  { %3650 = vmatpush3.msra.mxu0 %v2195_v54 }
 0x80b   :  { %3651 = vmatprep.subr.mxu0 %v2194_v55 }
 0x80c   :  { %3652 = vmatpush3.msra.mxu0 %v2194_v55 }
 0x80d   :  { %3661 = vmatprep.subr.mxu0 %v3777_v2 }
 0x8bd   :  { %v1600_v7 = vpop.f32.mrf.mxu0 }
 0x8be   :  { %3626 = vmatprep.mubr.msk.f32.mxu1 %vm386_vm0, %v1600_v7 }
 0x8bf   :  { %v3611_v8 = vpop.f32.mrf.mxu0 }
 0x8c1   :  { %v1765_v9 = vpop.f32.mrf.mxu0 }
 0x8c2   :  { %3627 = vmatmul.mubr.msk.f32.vlgmr.msra.gmra.mxu1 %vm386_vm0, %v1765_v9 }
 0x8c3   :  { %v3621_v10 = vpop.f32.mrf.mxu0  ;;  %3636 = vmatprep.mubr.msk.f32.mxu1 %vm3778_vm2, %v3777_v2 }
 0x8c5   :  { %v1936_v11 = vpop.f32.mrf.mxu0 }
 0x8c6   :  { %v1940_v12 = vmul.f32 1.3, %v1936_v11 }
 0x8c7   :  { %v3633_v14 = vpop.f32.mrf.mxu0 }
 0x8c8   :  { %v1941_v15 = vsel %vm655_vm4, %v1940_v12, -inf }
 0x8c9   :  { %1942 = vmax.xlane.f32.xlu1 %v1941_v15  ;;  %v2102_v18 = vpop.f32.mrf.mxu0 }
 0x8ca   :  { %v2106_v22 = vmul.f32 1.3, %v2102_v18 }
 0x8cb   :  { %v3643_v25 = vpop.f32.mrf.mxu0 }
 0x8cc   :  { %v2107_v26 = vsel %vm655_vm4, %v2106_v22, -inf }
 0x8cd   :  { %2108 = vmax.xlane.f32.xlu0 %v2107_v26 }
 0x8da   :  { %2118 = vrot.lane.b32.xlu1 %v1008_v21, %s3779_s30  ;;  %v4244_v21 = vadd.f32 %v3991_v38, %v383_v19 }
 0x8dc   :  { %v2287_v19 = vmul.f32 0.999995, %v4244_v21 }
 0x8de   :  { %2292 = vrot.lane.b32.xlu1 %v3986_v36, %s3784_s10 }
 0x952   :  { %v1943_v29 = vpop.xlane.xlu1 %1942 }
 0x953   :  { %v1944_v27 = vsub.f32 %v1940_v12, %v1943_v29 }
 0x955   :  { %v1945_v30 = vmul.f32 1.442695, %v1944_v27 }
 0x956   :  { %v2109_v31 = vpop.xlane.xlu0 %2108  ;;  %v2119_v28 = vpop.permute.xlu1 %2118 }
 0x957   :  { %3753 = vpow2.f32 %v1945_v30  ;;  %v2110_v32 = vsub.f32 %v2106_v22, %v2109_v31 }
 0x959   :  { %v2111_v33 = vmul.f32 1.442695, %v2110_v32 }
 0x95a   :  { %v2293_v42 = vpop.permute.xlu1 %2292 }
 0x95b   :  { %3755 = vpow2.f32 %v2111_v33 }
 0x964   :  { %v3754_v34 = vpop.eup %3753 }
 0x965   :  { %v1947_v39 = vsel %vm655_vm4, %v3754_v34, 0.0 }
 0x966   :  { %1948 = vadd.xlane.f32.xlu0 %v1947_v39 }
 0x968   :  { %v3756_v40 = vpop.eup %3755 }
 0x969   :  { %v2113_v41 = vsel %vm655_vm4, %v3756_v40, 0.0 }
 0x96a   :  { %2114 = vadd.xlane.f32.xlu1 %v2113_v41  ;;  %v2288_v41 = vmul.f32 0.999995, %v4249_v56 }
 0x97b   :  { %2462 = vrot.lane.b32.xlu1 %v4003_v43, %s3784_s10 }
 0x97c   :  { %1952 = vrot.lane.b32.xlu0 %v1007_v37, %s3779_s30 }
 0x980   :  { %2294 = vrot.lane.b32.xlu0 %v4244_v21, %s3784_s10  ;;  %v2633_v21 = vld [vmem:[%s4503_s13 + $0x10] sm:$0xff] }
 0x982   :  { %v4279_v58 = vpop.f32.mrf.mxu1 }
 0x984   :  { %2464 = vrot.lane.b32.xlu0 %v4249_v56, %s3784_s10  ;;  %v4281_v62 = vpop.f32.mrf.mxu1 }
 0x9ef   :  { %v1949_v45 = vpop.xlane.xlu0 %1948 }
 0x9f0   :  { %3757 = vrcp.f32 %v1949_v45  ;;  %v2634_v45 = vld [vmem:[%s4503_s13 + $0x18] sm:$0xff] }
 0x9f3   :  { %v2115_v47 = vpop.xlane.xlu1 %2114  ;;  %v1953_v48 = vpop.permute.xlu0 %1952 }
 0x9f4   :  { %3759 = vrcp.f32 %v2115_v47  ;;  %3635 = vmatpush3.msra.mxu1 %v1953_v48 }
 0x9f5   :  { %3644 = vmatprep.subr.mxu1 %v3777_v2 }
 0x9f7   :  { %v2295_v37 = vpop.permute.xlu0 %2294  ;;  %v2463_v52 = vpop.permute.xlu1 %2462 }
 0x9f8   :  { %v2296_v57 = vsel %vm386_vm0, %v2293_v42, %v2295_v37  ;;  %v2289_v42 = vmax.f32 %v2287_v19, 0.0 }
 0x9fb   :  { %v2465_v51 = vpop.permute.xlu0 %2464 }
 0x9fc   :  { %v2466_v53 = vsel %vm386_vm0, %v2463_v52, %v2465_v51  ;;  %v2632_v51 = vld [vmem:[%s4503_s13 + $0x8] sm:$0xff]  ;;  %v2631_v52 = vld [vmem:[%s4503_s13] sm:$0xff]  ;;  %s3787_s13 = smov 56  }
 0x9fd   :  { %v3758_v38 = vpop.eup %3757 }
 0x9fe   :  { %v1951_v35 = vmul.f32 %v3758_v38, %v3754_v34 }
 0xa00   :  { %3637 = vmatmul.mubr.msk.f32.vlgmr.msra.gmra.mxu1 %vm655_vm4, %v1951_v35 }
 0xa01   :  { %v3760_v44 = vpop.eup %3759  ;;  %3645 = vmatpush3.msra.mxu1 %v2119_v28  ;;  %3646 = vmatprep.mubr.msk.f32.mxu1 %vm3778_vm2, %v3777_v2  ;;  %v2290_v28 = vmax.f32 %v2288_v41, 0.0 }
 0xa02   :  { %3656 = vmatprep.subr.mxu1 %v3777_v2  ;;  %v2117_v50 = vmul.f32 %v3760_v44, %v3756_v40 }
 0xa04   :  { %3647 = vmatmul.mubr.msk.f32.vlgmr.msra.gmra.mxu1 %vm655_vm4, %v2117_v50 }
 0xa05   :  { %3657 = vmatpush3.xpose.msk.msra.mxu1 %vm286_vm3, %v2296_v57  ;;  %3658 = vmatprep.mubr.msk.f32.mxu1 %vm3778_vm2, %v3777_v2 }
 0xa06   :  { %3666 = vmatprep.subr.mxu1 %v3777_v2 }
 0xa08   :  { %3659 = vmatmul.mubr.msk.f32.vlgmr.msra.gmra.mxu1 %vm286_vm3, %v4076_v13 }
 0xa09   :  { %3667 = vmatpush3.xpose.msk.msra.mxu1 %vm286_vm3, %v2466_v53  ;;  %3668 = vmatprep.mubr.msk.f32.mxu1 %vm3778_vm2, %v3777_v2 }
 0xa0a   :  { %3676 = vmatprep.subr.mxu1 %v2634_v45 }
 0xa0c   :  { %3669 = vmatmul.mubr.msk.f32.vlgmr.msra.gmra.mxu1 %vm286_vm3, %v4078_v16 }
 0xa0d   :  { %3677 = vmatpush3.msra.mxu1 %v2634_v45 }
 0xa0e   :  { %3678 = vmatprep.subr.mxu1 %v2633_v21 }
 0xa0f   :  { %3679 = vmatpush3.msra.mxu1 %v2633_v21 }
 0xa10   :  { %3680 = vmatprep.subr.mxu1 %v2632_v51 }
 0xa11   :  { %3681 = vmatpush3.msra.mxu1 %v2632_v51 }
 0xa12   :  { %3682 = vmatprep.subr.mxu1 %v2631_v52 }
 0xa13   :  { %3683 = vmatpush3.msra.mxu1 %v2631_v52 }
 0xa14   :  { %3697 = vmatprep.subr.mxu1 %v3777_v2 }
 0xac0   :  { %v2024_v4 = vpop.f32.mrf.mxu1 }
 0xac1   :  { %3653 = vmatprep.mubr.msk.f32.mxu0 %vm386_vm0, %v2024_v4 }
 0xac2   :  { %v3638_v7 = vpop.f32.mrf.mxu1 }
 0xac3   :  { %v4333_v7 = vadd.f32 %v4068_v3, %v4013_v46 }
 0xac4   :  { %v2190_v8 = vpop.f32.mrf.mxu1 }
 0xac5   :  { %3654 = vmatmul.mubr.msk.f32.vlgmr.msra.gmra.mxu0 %vm386_vm0, %v2190_v8 }
 0xac6   :  { %v3648_v9 = vpop.f32.mrf.mxu1  ;;  %3663 = vmatprep.mubr.msk.f32.mxu0 %vm3778_vm2, %v3777_v2 }
 0xac8   :  { %v2368_v10 = vpop.f32.mrf.mxu1 }
 0xac9   :  { %v2372_v11 = vmul.f32 1.3, %v2368_v10 }
 0xaca   :  { %v3660_v12 = vpop.f32.mrf.mxu1 }
 0xacb   :  { %v2373_v14 = vsel %vm655_vm4, %v2372_v11, -inf }
 0xacc   :  { %2374 = vmax.xlane.f32.xlu1 %v2373_v14  ;;  %v2538_v15 = vpop.f32.mrf.mxu1 }
 0xacd   :  { %v2542_v18 = vmul.f32 1.3, %v2538_v15 }
 0xace   :  { %v3670_v22 = vpop.f32.mrf.mxu1 }
 0xacf   :  { %v2543_v25 = vsel %vm655_vm4, %v2542_v18, -inf }
 0xad0   :  { %2544 = vmax.xlane.f32.xlu0 %v2543_v25 }
 0xb55   :  { %v2375_v26 = vpop.xlane.xlu1 %2374 }
 0xb56   :  { %v2376_v29 = vsub.f32 %v2372_v11, %v2375_v26 }
 0xb58   :  { %v2377_v27 = vmul.f32 1.442695, %v2376_v29 }
 0xb59   :  { %v2545_v30 = vpop.xlane.xlu0 %2544 }
 0xb5a   :  { %3761 = vpow2.f32 %v2377_v27  ;;  %v2546_v31 = vsub.f32 %v2542_v18, %v2545_v30 }
 0xb5c   :  { %v2547_v32 = vmul.f32 1.442695, %v2546_v31 }
 0xb5e   :  { %3763 = vpow2.f32 %v2547_v32 }
 0xb67   :  { %v3762_v33 = vpop.eup %3761 }
 0xb68   :  { %v2379_v34 = vsel %vm655_vm4, %v3762_v33, 0.0 }
 0xb69   :  { %2380 = vadd.xlane.f32.xlu0 %v2379_v34 }
 0xb6b   :  { %v3764_v39 = vpop.eup %3763 }
 0xb6c   :  { %v2549_v40 = vsel %vm655_vm4, %v3764_v39, 0.0 }
 0xb6d   :  { %2550 = vadd.xlane.f32.xlu1 %v2549_v40 }
 0xb7e   :  { %2555 = vrot.lane.b32.xlu1 %v2290_v28, %s3786_s12 }
 0xb7f   :  { %2385 = vrot.lane.b32.xlu0 %v2289_v42, %s3786_s12 }
 0xb82   :  { %2730 = vrot.lane.b32.xlu1 %v4076_v13, %s3779_s30 }
 0xb83   :  { %2896 = vrot.lane.b32.xlu0 %v4078_v16, %s3779_s30 }
 0xb85   :  { %v4326_v53 = vpop.f32.mrf.mxu0 }
 0xb87   :  { %v4328_v54 = vpop.f32.mrf.mxu0 }
 0xbf2   :  { %v2381_v56 = vpop.xlane.xlu0 %2380 }
 0xbf3   :  { %3765 = vrcp.f32 %v2381_v56 }
 0xbf6   :  { %v2551_v47 = vpop.xlane.xlu1 %2550  ;;  %v2386_v48 = vpop.permute.xlu0 %2385 }
 0xbf7   :  { %3767 = vrcp.f32 %v2551_v47  ;;  %3662 = vmatpush3.msra.mxu0 %v2386_v48 }
 0xbf8   :  { %3671 = vmatprep.subr.mxu0 %v3777_v2 }
 0xbfa   :  { %v2556_v37 = vpop.permute.xlu1 %2555  ;;  %v2897_v10 = vpop.permute.xlu0 %2896 }
 0xbfe   :  { %v2731_v57 = vpop.permute.xlu1 %2730 }
 0xc00   :  { %v3766_v38 = vpop.eup %3765 }
 0xc01   :  { %v2383_v35 = vmul.f32 %v3766_v38, %v3762_v33  ;;  %v2726_v33 = vmul.f32 0.999995, %v4017_v49 }
 0xc03   :  { %3664 = vmatmul.mubr.msk.f32.vlgmr.msra.gmra.mxu0 %vm655_vm4, %v2383_v35  ;;  %v2728_v34 = vmax.f32 %v2726_v33, 0.0 }
 0xc04   :  { %v3768_v44 = vpop.eup %3767  ;;  %3672 = vmatpush3.msra.mxu0 %v2556_v37  ;;  %3673 = vmatprep.mubr.msk.f32.mxu0 %vm3778_vm2, %v3777_v2 }
 0xc05   :  { %3687 = vmatprep.subr.mxu0 %v3777_v2  ;;  %v2553_v50 = vmul.f32 %v3768_v44, %v3764_v39 }
 0xc07   :  { %3674 = vmatmul.mubr.msk.f32.vlgmr.msra.gmra.mxu0 %vm655_vm4, %v2553_v50 }
 0xc08   :  { %3688 = vmatpush3.xpose.msk.msra.mxu0 %vm286_vm3, %v4017_v49  ;;  %3689 = vmatprep.mubr.msk.f32.mxu0 %vm3778_vm2, %v3777_v2 }
 0xc09   :  { %3692 = vmatprep.subr.mxu0 %v3777_v2 }
 0xc0b   :  { %3690 = vmatmul.mubr.msk.f32.vlgmr.msra.gmra.mxu0 %vm286_vm3, %v2731_v57 }
 0xc0c   :  { %3694 = vmatprep.mubr.msk.f32.mxu0 %vm3778_vm2, %v3777_v2 }
 0xcc3   :  { %v2457_v55 = vpop.f32.mrf.mxu0 }
 0xcc4   :  { %3684 = vmatprep.mubr.msk.f32.mxu1 %vm286_vm3, %v2457_v55 }
 0xcc5   :  { %v3665_v4 = vpop.f32.mrf.mxu0 }
 0xcc6   :  { %v2727_v4 = vmul.f32 0.999995, %v4333_v7 }
 0xcc7   :  { %v2627_v8 = vpop.f32.mrf.mxu0 }
 0xcc8   :  { %3685 = vmatmul.mubr.msk.f32.vlgmr.msra.gmra.mxu1 %vm286_vm3, %v2627_v8 }
 0xcc9   :  { %3698 = vmatpush3.xpose.msk.msra.mxu1 %vm286_vm3, %v4333_v7  ;;  %v3675_v9 = vpop.f32.mrf.mxu0  ;;  %3699 = vmatprep.mubr.msk.f32.mxu1 %vm3778_vm2, %v3777_v2 }
 0xcca   :  { %v2729_v9 = vmax.f32 %v2727_v4, 0.0 }
 0xccb   :  { %v2803_v11 = vpop.f32.mrf.mxu0 }
 0xccc   :  { %v2807_v12 = vmul.f32 1.3, %v2803_v11  ;;  %3700 = vmatmul.mubr.msk.f32.vlgmr.msra.gmra.mxu1 %vm286_vm3, %v2897_v10 }
 0xccd   :  { %v3691_v14 = vpop.f32.mrf.mxu0 }
 0xcce   :  { %v2808_v15 = vsel %vm655_vm4, %v2807_v12, -inf }
 0xccf   :  { %2809 = vmax.xlane.f32.xlu1 %v2808_v15 }
 0xd58   :  { %v2810_v46 = vpop.xlane.xlu1 %2809 }
 0xd59   :  { %v2811_v3 = vsub.f32 %v2807_v12, %v2810_v46 }
 0xd5b   :  { %v2812_v18 = vmul.f32 1.442695, %v2811_v3 }
 0xd5d   :  { %3769 = vpow2.f32 %v2812_v18 }
 0xd6a   :  { %v3770_v31 = vpop.eup %3769 }
 0xd6b   :  { %v2814_v32 = vsel %vm655_vm4, %v3770_v31, 0.0 }
 0xd88   :  { %v4342_v22 = vpop.f32.mrf.mxu1 }
 0xd8a   :  { %v4344_v25 = vpop.f32.mrf.mxu1 }
 0xd8c   :  { %v2969_v26 = vpop.f32.mrf.mxu1 }
 0xd8d   :  { %v2973_v29 = vmul.f32 1.3, %v2969_v26 }
 0xd8e   :  { %v3701_v27 = vpop.f32.mrf.mxu1 }
 0xd8f   :  { %v2974_v30 = vsel %vm655_vm4, %v2973_v29, -inf }
 0xd90   :  { %2975 = vmax.xlane.f32.xlu0 %v2974_v30 }
 0xd94   :  { %2815 = vadd.xlane.f32.xlu0 %v2814_v32 }
 0xdaa   :  { %2820 = vrot.lane.b32.xlu0 %v2728_v34, %s3785_s18 }
 0xdae   :  { %916 = vrot.lane.b32.xlu0 %v4044_v61, %s3782_s9 }
 0xdb2   :  { %1346 = vrot.lane.b32.xlu0 %v4044_v61, %s3787_s13 }
 0xdb6   :  { %1773 = vrot.lane.b32.xlu0 %v4003_v43, %s3786_s12 }
 0xdba   :  { %2198 = vrot.lane.b32.xlu0 %v4003_v43, %s3781_s4 }
 0xdbe   :  { %2637 = vrot.lane.b32.xlu0 %v4078_v16, %s3785_s18 }
 0xdc2   :  { %3068 = vrot.lane.b32.xlu0 %v4078_v16, %s3783_s25 }
 0xe19   :  { %v2976_v49 = vpop.xlane.xlu0 %2975 }
 0xe1a   :  { %v2977_v39 = vsub.f32 %v2973_v29, %v2976_v49 }
 0xe1c   :  { %v2978_v40 = vmul.f32 1.442695, %v2977_v39 }
 0xe1d   :  { %v2816_v41 = vpop.xlane.xlu0 %2815 }
 0xe1e   :  { %3771 = vpow2.f32 %v2978_v40 }
 0xe1f   :  { %3773 = vrcp.f32 %v2816_v41 }
 0xe21   :  { %v2821_v19 = vpop.permute.xlu0 %2820 }
 0xe22   :  { %3693 = vmatpush3.msra.mxu0 %v2821_v19 }
 0xe23   :  { %3702 = vmatprep.subr.mxu0 %v3777_v2 }
 0xe25   :  { %v917_v61 = vpop.permute.xlu0 %916 }
 0xe26   :  { %v998_v28 = vadd.f32 %v4173_v59, %v917_v61 }
 0xe28   :  { %v1002_v42 = vmul.f32 0.999995, %v998_v28 }
 0xe29   :  { %v1347_v43 = vpop.permute.xlu0 %1346 }
 0xe2a   :  { %v1428_v45 = vadd.f32 %v4219_v5, %v1347_v43  ;;  %v1004_v35 = vmax.f32 %v1002_v42, 0.0 }
 0xe2b   :  { %v3772_v21 = vpop.eup %3771 }
 0xe2c   :  { %v3774_v56 = vpop.eup %3773  ;;  %v1432_v16 = vmul.f32 0.999995, %v1428_v45  ;;  %v2980_v47 = vsel %vm655_vm4, %v3772_v21, 0.0 }
 0xe2d   :  { %2981 = vadd.xlane.f32.xlu1 %v2980_v47  ;;  %v1774_v48 = vpop.permute.xlu0 %1773  ;;  %v2818_v38 = vmul.f32 %v3774_v56, %v3770_v31 }
 0xe2e   :  { %v1434_v37 = vmax.f32 %v1432_v16, 0.0  ;;  %v1855_v44 = vadd.f32 %v4279_v58, %v1774_v48 }
 0xe2f   :  { %3695 = vmatmul.mubr.msk.f32.vlgmr.msra.gmra.mxu0 %vm655_vm4, %v2818_v38 }
 0xe30   :  { %3704 = vmatprep.mubr.msk.f32.mxu0 %vm3778_vm2, %v3777_v2  ;;  %v4370_v59 = vadd.f32 %v1434_v37, %v1004_v35  ;;  %v1859_v50 = vmul.f32 0.999995, %v1855_v44  ;;  %v3065_v2 = vld [vmem:[%s4504_s14 + $0x18] sm:$0xff] }
 0xe31   :  { %v2199_v5 = vpop.permute.xlu0 %2198  ;;  %3707 = vmatprep.subr.mxu1 %v3065_v2 }
 0xe32   :  { %v2280_v57 = vadd.f32 %v4326_v53, %v2199_v5  ;;  %v1861_v52 = vmax.f32 %v1859_v50, 0.0  ;;  %3708 = vmatpush3.msra.mxu1 %v3065_v2  ;;  %v3310_v2 = vadd.f32 %v4370_v59, %v3955_v24 }
 0xe34   :  { %v2284_v51 = vmul.f32 0.999995, %v2280_v57 }
 0xe35   :  { %v2638_v61 = vpop.permute.xlu0 %2637 }
 0xe36   :  { %v2286_v55 = vmax.f32 %v2284_v51, 0.0  ;;  %v2719_v42 = vadd.f32 %v4342_v22, %v2638_v61 }
 0xe38   :  { %v4374_v8 = vadd.f32 %v2286_v55, %v1861_v52  ;;  %v2723_v56 = vmul.f32 0.999995, %v2719_v42 }
 0xe39   :  { %v3069_v28 = vpop.permute.xlu0 %3068 }
 0xe3a   :  { %v2725_v44 = vmax.f32 %v2723_v56, 0.0 }
 0xe3e   :  { %2986 = vrot.lane.b32.xlu1 %v2729_v9, %s3785_s18  ;;  %v3237_v9 = vadd.f32 %v4374_v8, %v3938_v20 }
 0xe42   :  { %914 = vrot.lane.b32.xlu1 %v4058_v1, %s3782_s9 }
 0xe46   :  { %1344 = vrot.lane.b32.xlu1 %v4058_v1, %s3787_s13  ;;  %v3064_v1 = vld [vmem:[%s4504_s14 + $0x10] sm:$0xff] }
 0xe47   :  { %3709 = vmatprep.subr.mxu1 %v3064_v1 }
 0xe48   :  { %3710 = vmatpush3.msra.mxu1 %v3064_v1 }
 0xe4a   :  { %1771 = vrot.lane.b32.xlu1 %v3986_v36, %s3786_s12 }
 0xe4e   :  { %2196 = vrot.lane.b32.xlu1 %v3986_v36, %s3781_s4  ;;  %v3063_v36 = vld [vmem:[%s4504_s14 + $0x8] sm:$0xff] }
 0xe4f   :  { %3711 = vmatprep.subr.mxu1 %v3063_v36 }
 0xe50   :  { %3712 = vmatpush3.msra.mxu1 %v3063_v36 }
 0xe52   :  { %2635 = vrot.lane.b32.xlu1 %v4076_v13, %s3785_s18 }
 0xe56   :  { %3066 = vrot.lane.b32.xlu1 %v4076_v13, %s3783_s25  ;;  %v3062_v13 = vld [vmem:[%s4504_s14] sm:$0xff] }
 0xe57   :  { %3713 = vmatprep.subr.mxu1 %v3062_v13 }
 0xe58   :  { %3714 = vmatpush3.msra.mxu1 %v3062_v13 }
 0xeb6   :  { %v2982_v58 = vpop.xlane.xlu1 %2981 }
 0xeb7   :  { %3775 = vrcp.f32 %v2982_v58 }
 0xeba   :  { %v2987_v53 = vpop.permute.xlu1 %2986 }
 0xebb   :  { %3703 = vmatpush3.msra.mxu0 %v2987_v53 }
 0xebe   :  { %v915_v7 = vpop.permute.xlu1 %914 }
 0xebf   :  { %v993_v10 = vadd.f32 %v4175_v60, %v915_v7 }
 0xec1   :  { %v1001_v12 = vmul.f32 0.999995, %v993_v10 }
 0xec2   :  { %v1345_v11 = vpop.permute.xlu1 %1344 }
 0xec3   :  { %v1423_v14 = vadd.f32 %v4221_v6, %v1345_v11  ;;  %v1003_v26 = vmax.f32 %v1001_v12, 0.0 }
 0xec4   :  { %v3776_v15 = vpop.eup %3775 }
 0xec5   :  { %v1431_v46 = vmul.f32 0.999995, %v1423_v14  ;;  %v2984_v3 = vmul.f32 %v3776_v15, %v3772_v21 }
 0xec6   :  { %v1772_v18 = vpop.permute.xlu1 %1771 }
 0xec7   :  { %v1433_v29 = vmax.f32 %v1431_v46, 0.0  ;;  %v1850_v27 = vadd.f32 %v4281_v62, %v1772_v18  ;;  %3705 = vmatmul.mubr.msk.f32.vlgmr.msra.gmra.mxu0 %vm655_vm4, %v2984_v3 }
 0xec9   :  { %v3307_v30 = vadd.f32 %v1433_v29, %v1003_v26  ;;  %v1858_v32 = vmul.f32 0.999995, %v1850_v27 }
 0xeca   :  { %v2197_v31 = vpop.permute.xlu1 %2196 }
 0xecb   :  { %v2275_v33 = vadd.f32 %v4328_v54, %v2197_v31  ;;  %v1860_v34 = vmax.f32 %v1858_v32, 0.0 }
 0xecd   :  { %v2283_v60 = vmul.f32 0.999995, %v2275_v33 }
 0xecf   :  { %v2285_v49 = vmax.f32 %v2283_v60, 0.0 }
 0xed1   :  { %v3234_v39 = vadd.f32 %v2285_v49, %v1860_v34 }
 0xed3   :  { %v3236_v6 = vadd.f32 %v3234_v39, %v3928_v17  ;;  %v2636_v17 = vpop.permute.xlu1 %2635 }
 0xed4   :  { %v2714_v45 = vadd.f32 %v4344_v25, %v2636_v17  ;;  %v3309_v25 = vadd.f32 %v3307_v30, %v3951_v23 }
 0xed5   :  { %3238 = vxpose.xlu0.b32.start.end [1/1] (short) (narrow) %v3236_v6, 16 }
 0xed6   :  { %v2722_v38 = vmul.f32 0.999995, %v2714_v45 }
 0xed7   :  { %v3067_v47 = vpop.permute.xlu1 %3066 }
 0xed8   :  { %v2724_v57 = vmax.f32 %v2722_v38, 0.0 }
 0xeef   :  { %v2892_v40 = vpop.f32.mrf.mxu0 }
 0xef0   :  { %3715 = vmatprep.mubr.msk.f32.mxu1 %vm286_vm3, %v2892_v40 }
 0xef1   :  { %v3696_v41 = vpop.f32.mrf.mxu0 }
 0xf51   :  { %v3254_v43 = vpop.trf.xlu0 }
 0xf52   :  { %3270 = vst.msk [vmem:[%s4505_s16] sm:$0xff] %vm655_vm4, %v3254_v43 }
 0xf55   :  { %v3255_v54 = vpop.trf.xlu0 }
 0xf56   :  { %3271 = vst.msk [vmem:[%s4505_s16 + $0x8] sm:$0xff] %vm655_vm4, %v3255_v54 }
 0xf87   :  { %v3058_v19 = vpop.f32.mrf.mxu0 }
 0xf88   :  { %3716 = vmatmul.mubr.msk.f32.vlgmr.msra.gmra.mxu1 %vm286_vm3, %v3058_v19 }
 0xf89   :  { %v3706_v62 = vpop.f32.mrf.mxu0 }
0x1048   :  { %v3717_v21 = vpop.f32.mrf.mxu1 }
0x1049   :  { %v3150_v16 = vadd.f32 %v3717_v21, %v3069_v28 }
0x104a   :  { %v3144_v48 = vpop.f32.mrf.mxu1 }
0x104b   :  { %v3154_v35 = vmul.f32 0.999995, %v3150_v16  ;;  %v3145_v37 = vadd.f32 %v3144_v48, %v3067_v47 }
0x104d   :  { %v3156_v5 = vmax.f32 %v3154_v35, 0.0  ;;  %v3153_v50 = vmul.f32 0.999995, %v3145_v37 }
0x104f   :  { %v3155_v51 = vmax.f32 %v3153_v50, 0.0  ;;  %v3158_v52 = vadd.f32 %v3156_v5, %v2725_v44 }
0x1051   :  { %v3157_v55 = vadd.f32 %v3155_v51, %v2724_v57  ;;  %v3160_v4 = vadd.f32 %v3158_v52, %v4054_v0 }
0x1053   :  { %3197 = vxpose.xlu0.b32.start.end [1/1] (short) (narrow) %v3160_v4, 32  ;;  %v3159_v22 = vadd.f32 %v3157_v55, %v4049_v63 }
0x1055   :  { %3161 = vxpose.xlu1.b32.start.end [1/1] (short) (narrow) %v3159_v22, 32 }
0x1060   :  { %3311 = vxpose.xlu0.b32.start.end [1/1] (short) (narrow) %v3309_v25, 24 }
0x1062   :  { %3272 = vxpose.xlu1.b32.start.end [1/1] (short) (narrow) %v3237_v9, 16 }
0x1069   :  { %3346 = vxpose.xlu0.b32.start.end [1/1] (short) (narrow) %v3310_v2, 24 }
0x10cf   :  { %v3213_v1 = vpop.trf.xlu0 }
0x10d0   :  { %3457 = vst.msk [vmem:[%s4506_s15 + $0x20] sm:$0xff] %vm655_vm4, %v3213_v1 }
0x10d1   :  { %v3177_v0 = vpop.trf.xlu1 }
0x10d2   :  { %3193 = vst.msk [vmem:[%s4506_s15] sm:$0xff] %vm655_vm4, %v3177_v0 }
0x10d3   :  { %v3214_v23 = vpop.trf.xlu0 }
0x10d4   :  { %3458 = vst.msk [vmem:[%s4506_s15 + $0x28] sm:$0xff] %vm655_vm4, %v3214_v23 }
0x10d5   :  { %v3178_v20 = vpop.trf.xlu1 }
0x10d6   :  { %3194 = vst.msk [vmem:[%s4506_s15 + $0x8] sm:$0xff] %vm655_vm4, %v3178_v20 }
0x10d7   :  { %v3215_v24 = vpop.trf.xlu0 }
0x10d8   :  { %3459 = vst.msk [vmem:[%s4506_s15 + $0x30] sm:$0xff] %vm655_vm4, %v3215_v24 }
0x10d9   :  { %v3179_v63 = vpop.trf.xlu1 }
0x10da   :  { %3195 = vst.msk [vmem:[%s4506_s15 + $0x10] sm:$0xff] %vm655_vm4, %v3179_v63 }
0x10db   :  { %v3216_v59 = vpop.trf.xlu0 }
0x10dc   :  { %3460 = vst.msk [vmem:[%s4506_s15 + $0x38] sm:$0xff] %vm655_vm4, %v3216_v59 }
0x10dd   :  { %v3180_v8 = vpop.trf.xlu1 }
0x10de   :  { %3196 = vst.msk [vmem:[%s4506_s15 + $0x18] sm:$0xff] %vm655_vm4, %v3180_v8 }
0x10df   :  { %v3327_v36 = vpop.trf.xlu0 }
0x10e0   :  { %3343 = vst.msk [vmem:[%s4507_s17] sm:$0xff] %vm655_vm4, %v3327_v36 }
0x10e1   :  { %v3288_v13 = vpop.trf.xlu1 }
0x10e2   :  { %3461 = vst.msk [vmem:[%s4505_s16 + $0x10] sm:$0xff] %vm655_vm4, %v3288_v13 }
0x10e3   :  { %v3328_v58 = vpop.trf.xlu0 }
0x10e4   :  { %3344 = vst.msk [vmem:[%s4507_s17 + $0x8] sm:$0xff] %vm655_vm4, %v3328_v58 }
0x10e5   :  { %v3289_v53 = vpop.trf.xlu1 }
0x10e6   :  { %3462 = vst.msk [vmem:[%s4505_s16 + $0x18] sm:$0xff] %vm655_vm4, %v3289_v53 }
0x10e7   :  { %v3329_v7 = vpop.trf.xlu0 }
0x10e8   :  { %3345 = vst.msk [vmem:[%s4507_s17 + $0x10] sm:$0xff] %vm655_vm4, %v3329_v7 }
0x10eb   :  { %v3362_v10 = vpop.trf.xlu0 }
0x10ec   :  { %3463 = vst.msk [vmem:[%s4507_s17 + $0x18] sm:$0xff] %vm655_vm4, %v3362_v10 }
0x10ef   :  { %v3363_v11 = vpop.trf.xlu0 }
0x10f0   :  { %3464 = vst.msk [vmem:[%s4507_s17 + $0x20] sm:$0xff] %vm655_vm4, %v3363_v11 }
0x10f3   :  { %v3364_v12 = vpop.trf.xlu0 }
0x10f4   :  { %3465 = vst.msk [vmem:[%s4507_s17 + $0x28] sm:$0xff] %vm655_vm4, %v3364_v12 }

</bundles_post_ra>
